<compile_context>
chip_gen: v7x
topology: tpu7x:2x2x1
jax: 0.10.0
libtpu: 0.0.40
codegen_flags: <defaults>
</compile_context>

<pallas_src>
import jax
import jax.numpy as jnp
from jax.experimental import pallas as pl
from jax.experimental.pallas import tpu as pltpu

# ---- model dimensions (small, synthetic) ----
B, S, D = 2, 8, 32          # batch, seq, hidden
NH, DH = 2, 16              # heads, head dim
F = 4 * D                   # FFN intermediate (=128)
VOCAB, MAXPOS = 100, 64
N_LAYERS = 2
N_CLASSES = 3               # width of one_hot_encoding
DNN_HIDDEN = 64
DNN_IN = D + 1 + N_CLASSES  # cat(CLS, exposure_duration[:,None], one_hot)
OUT_PAD = 128               # lane-dense padding of the 1-wide DNN output
EPS = 1e-5


# ---------------- in-kernel helpers ----------------

def _layer_norm(x, gamma, beta):
    mu = jnp.mean(x, axis=-1, keepdims=True)
    var = jnp.mean((x - mu) ** 2, axis=-1, keepdims=True)
    return (x - mu) * jax.lax.rsqrt(var + EPS) * gamma + beta


def _softmax_rows(s):
    m = jnp.max(s, axis=-1, keepdims=True)
    e = jnp.exp(s - m)
    return e * pl.reciprocal(jnp.sum(e, axis=-1, keepdims=True), approx=True)


# ---------------- the single fused Pallas kernel ----------------

def fused_fishbait_kernel(x_ref, bias_ref, emb_ln_ref,
                          w_qkv_ref, b_qkv_ref, w_o_ref, lvecs_ref,
                          w_f1_ref, b_f1_ref, w_f2_ref,
                          dnn_w1_ref, dnn_b1_ref, dnn_w2_ref, dnn_b2_ref,
                          dur_ref, oh_ref, out_ref):
    x = x_ref[...]                         # (B*S, D) token+position embeddings
    bias = bias_ref[...]                   # (B*S, B*S) additive attention bias

    # Embedding LayerNorm.
    x = _layer_norm(x, emb_ln_ref[0:1, :], emb_ln_ref[1:2, :])

    scale = 1.0 / (DH ** 0.5)
    for l in range(N_LAYERS):              # static unroll (N_LAYERS == 2)
        lv = lvecs_ref[l]                  # (8, D): [b_o, g1, be1, b_f2, g2, be2, pad, pad]
        b_o, g1, be1 = lv[0:1], lv[1:2], lv[2:3]
        b_f2, g2, be2 = lv[3:4], lv[4:5], lv[5:6]

        # Multi-head self-attention over the whole (B*S, D) slab; cross-batch and
        # padded-key positions are removed by `bias`.  Per-head weights avoid any
        # lane slicing / lane concatenation.
        attn = None
        for h in range(NH):                # static unroll over heads
            base = l * 3 * NH + h          # (layer, which, head) -> flat index
            q = jnp.dot(x, w_qkv_ref[base],
                        preferred_element_type=jnp.float32) + b_qkv_ref[base]
            k = jnp.dot(x, w_qkv_ref[base + NH],
                        preferred_element_type=jnp.float32) + b_qkv_ref[base + NH]
            v = jnp.dot(x, w_qkv_ref[base + 2 * NH],
                        preferred_element_type=jnp.float32) + b_qkv_ref[base + 2 * NH]

            s = jax.lax.dot_general(q, k, (((1,), (1,)), ((), ())),
                                    preferred_element_type=jnp.float32)
            p = _softmax_rows(s * scale + bias)                     # (B*S, B*S)
            ctx = jnp.dot(p, v, preferred_element_type=jnp.float32)  # (B*S, DH)
            contrib = jnp.dot(ctx, w_o_ref[l * NH + h],
                              preferred_element_type=jnp.float32)    # (B*S, D)
            attn = contrib if attn is None else attn + contrib

        h1 = _layer_norm(x + attn + b_o, g1, be1)

        # Feed-forward.
        f = jnp.dot(h1, w_f1_ref[l], preferred_element_type=jnp.float32) + b_f1_ref[l]
        f = jax.nn.gelu(f, approximate=True)
        f = jnp.dot(f, w_f2_ref[l], preferred_element_type=jnp.float32) + b_f2
        x = _layer_norm(h1 + f, g2, be2)

    # ---- DNN head on the CLS rows, fed straight from registers ----
    cls = x.reshape(B, S, D)[:, 0, :]                  # (B, D) CLS tokens
    w1_cls = dnn_w1_ref[0:D, :]                        # (D, DNN_HIDDEN)
    w1_dur = dnn_w1_ref[D:D + 1, :]                    # (1, DNN_HIDDEN)
    w1_oh = dnn_w1_ref[D + 1:DNN_IN, :]                # (N_CLASSES, DNN_HIDDEN)

    # concat(cls, dur, one_hot) @ W1 == cls@W1_cls + dur*W1_dur + one_hot@W1_oh
    hdn = (jnp.dot(cls, w1_cls, preferred_element_type=jnp.float32)
           + dur_ref[...] * w1_dur
           + jnp.dot(oh_ref[...], w1_oh, preferred_element_type=jnp.float32)
           + dnn_b1_ref[...])
    hdn = jnp.maximum(hdn, 0.0)                        # ReLU
    out_ref[...] = (jnp.dot(hdn, dnn_w2_ref[...],
                            preferred_element_type=jnp.float32) + dnn_b2_ref[...])


# ---------------- wrapper ----------------

def run_fishbait(params, sent_id, mask, exposure_duration, one_hot_encoding):
    (word_emb, pos_emb, emb_ln, w_qkv, b_qkv, w_o, lvecs,
     w_f1, b_f1, w_f2, dnn_w1, dnn_b1, dnn_w2p, dnn_b2p) = params

    # TODO(synk): token/position embedding gather stays in plain JAX glue (a
    # data-dependent row gather has no cheap Pallas win at this size).
    pos_ids = jnp.arange(S)
    x_raw = (word_emb[sent_id] + pos_emb[pos_ids][None, :, :]).reshape(B * S, D)

    # Additive attention bias over the flattened (B*S) token slab:
    # block-diagonal across batches + mask for padded key positions.
    batch_ids = jnp.repeat(jnp.arange(B), S)
    same_batch = batch_ids[:, None] == batch_ids[None, :]
    key_valid = mask.reshape(B * S) > 0
    attn_bias = jnp.where(same_batch & key_valid[None, :],
                          0.0, -1e9).astype(jnp.float32)

    out_padded = pl.pallas_call(
        fused_fishbait_kernel,
        out_shape=jax.ShapeDtypeStruct((B, OUT_PAD), jnp.float32),
        compiler_params=pltpu.CompilerParams(vmem_limit_bytes=32 * 1024 * 1024),
    )(x_raw, attn_bias, emb_ln, w_qkv, b_qkv, w_o, lvecs,
      w_f1, b_f1, w_f2, dnn_w1, dnn_b1, dnn_w2p, dnn_b2p,
      exposure_duration[:, None].astype(jnp.float32),
      one_hot_encoding.astype(jnp.float32))

    return out_padded[:, :1]               # drop the lane padding -> (B, 1)


# ---------------- parameters (deterministic, synthetic) ----------------

def init_params(key):
    keys = jax.random.split(key, 8)
    word_emb = 0.02 * jax.random.normal(keys[0], (VOCAB, D), jnp.float32)
    pos_emb = 0.02 * jax.random.normal(keys[1], (MAXPOS, D), jnp.float32)
    emb_ln = jnp.stack([jnp.ones(D, jnp.float32), jnp.zeros(D, jnp.float32)])

    # per-(layer, q/k/v, head) projection blocks, flat index (l*3 + which)*NH + h
    w_qkv = 0.02 * jax.random.normal(keys[2], (N_LAYERS * 3 * NH, D, DH), jnp.float32)
    b_qkv = jnp.zeros((N_LAYERS * 3 * NH, 1, DH), jnp.float32)
    # per-(layer, head) output-projection block, flat index l*NH + h
    w_o = 0.02 * jax.random.normal(keys[3], (N_LAYERS * NH, DH, D), jnp.float32)

    # per-layer (D,)-wide vectors packed into one sublane-aligned slab:
    # rows [b_o, ln1_g, ln1_b, b_ffn2, ln2_g, ln2_b, pad, pad]
    lvecs = (jnp.zeros((N_LAYERS, 8, D), jnp.float32)
             .at[:, 1, :].set(1.0)
             .at[:, 4, :].set(1.0))

    w_f1 = 0.02 * jax.random.normal(keys[4], (N_LAYERS, D, F), jnp.float32)
    b_f1 = jnp.zeros((N_LAYERS, 1, F), jnp.float32)
    w_f2 = 0.02 * jax.random.normal(keys[5], (N_LAYERS, F, D), jnp.float32)

    dnn_w1 = 0.02 * jax.random.normal(keys[6], (DNN_IN, DNN_HIDDEN), jnp.float32)
    dnn_b1 = jnp.zeros((1, DNN_HIDDEN), jnp.float32)
    dnn_w2 = 0.02 * jax.random.normal(keys[7], (DNN_HIDDEN, 1), jnp.float32)
    # pad the 1-wide head output to 128 lanes for a lane-dense store
    dnn_w2p = jnp.zeros((DNN_HIDDEN, OUT_PAD), jnp.float32).at[:, :1].set(dnn_w2)
    dnn_b2p = jnp.zeros((1, OUT_PAD), jnp.float32)

    return (word_emb, pos_emb, emb_ln, w_qkv, b_qkv, w_o, lvecs,
            w_f1, b_f1, w_f2, dnn_w1, dnn_b1, dnn_w2p, dnn_b2p)


# ---------------- main ----------------

if __name__ == "__main__":
    key = jax.random.PRNGKey(0)
    k_param, k_ids, k_dur, k_cls = jax.random.split(key, 4)

    params = init_params(k_param)

    sent_id = jax.random.randint(k_ids, (B, S), 0, VOCAB, dtype=jnp.int32)
    mask = jnp.ones((B, S), jnp.int32).at[1, S - 2:].set(0)   # pad tail of example 1
    exposure_duration = jax.random.uniform(k_dur, (B,), jnp.float32) * 10.0
    one_hot_encoding = jax.nn.one_hot(
        jax.random.randint(k_cls, (B,), 0, N_CLASSES), N_CLASSES,
        dtype=jnp.float32)

    fwd = jax.jit(run_fishbait)
    out = fwd(params, sent_id, mask, exposure_duration, one_hot_encoding)
    jax.block_until_ready(out)
    assert out.shape == (B, 1)
    print("KERNEL_OK")
</pallas_src>

<mosaic_0001>
module attributes {stable_mosaic.version = 11 : i64} {
  func.func @fused_fishbait_kernel(%arg0: memref<16x32xf32, #tpu.memory_space<vmem>>, %arg1: memref<16x16xf32, #tpu.memory_space<vmem>>, %arg2: memref<2x32xf32, #tpu.memory_space<vmem>>, %arg3: memref<12x32x16xf32, #tpu.memory_space<vmem>>, %arg4: memref<12x1x16xf32, #tpu.memory_space<vmem>>, %arg5: memref<4x16x32xf32, #tpu.memory_space<vmem>>, %arg6: memref<2x8x32xf32, #tpu.memory_space<vmem>>, %arg7: memref<2x32x128xf32, #tpu.memory_space<vmem>>, %arg8: memref<2x1x128xf32, #tpu.memory_space<vmem>>, %arg9: memref<2x128x32xf32, #tpu.memory_space<vmem>>, %arg10: memref<36x64xf32, #tpu.memory_space<vmem>>, %arg11: memref<1x64xf32, #tpu.memory_space<vmem>>, %arg12: memref<64x128xf32, #tpu.memory_space<vmem>>, %arg13: memref<1x128xf32, #tpu.memory_space<vmem>>, %arg14: memref<2x1xf32, #tpu.memory_space<vmem>>, %arg15: memref<2x3xf32, #tpu.memory_space<vmem>>, %arg16: memref<2x128xf32, #tpu.memory_space<vmem>>) attributes {dimension_semantics = [], scalar_prefetch = 0 : i64, scratch_operands = 0 : i64, tpu.core_type = #tpu.core_type<tc>} {
    %c0 = arith.constant 0 : index
    %c0_0 = arith.constant 0 : index
    %0 = vector.load %arg0[%c0, %c0_0] : memref<16x32xf32, #tpu.memory_space<vmem>>, vector<16x32xf32>
    %c0_1 = arith.constant 0 : index
    %c0_2 = arith.constant 0 : index
    %1 = vector.load %arg1[%c0_1, %c0_2] : memref<16x16xf32, #tpu.memory_space<vmem>>, vector<16x16xf32>
    %c0_3 = arith.constant 0 : index
    %c0_4 = arith.constant 0 : index
    %2 = vector.load %arg2[%c0_3, %c0_4] : memref<2x32xf32, #tpu.memory_space<vmem>>, vector<1x32xf32>
    %c1 = arith.constant 1 : index
    %c0_5 = arith.constant 0 : index
    %3 = vector.load %arg2[%c1, %c0_5] : memref<2x32xf32, #tpu.memory_space<vmem>>, vector<1x32xf32>
    %cst = arith.constant dense<0.000000e+00> : vector<16xf32>
    %4 = vector.multi_reduction <add>, %0, %cst [1] : vector<16x32xf32> to vector<16xf32>
    %5 = vector.shape_cast %4 : vector<16xf32> to vector<16x1xf32>
    %cst_6 = arith.constant 3.200000e+01 : f32
    %6 = vector.broadcast %cst_6 : f32 to vector<16x1xf32>
    %7 = arith.divf %5, %6 : vector<16x1xf32>
    %8 = vector.broadcast %7 : vector<16x1xf32> to vector<16x32xf32>
    %9 = arith.subf %0, %8 : vector<16x32xf32>
    %10 = arith.mulf %9, %9 : vector<16x32xf32>
    %cst_7 = arith.constant dense<0.000000e+00> : vector<16xf32>
    %11 = vector.multi_reduction <add>, %10, %cst_7 [1] : vector<16x32xf32> to vector<16xf32>
    %12 = vector.shape_cast %11 : vector<16xf32> to vector<16x1xf32>
    %cst_8 = arith.constant 3.200000e+01 : f32
    %13 = vector.broadcast %cst_8 : f32 to vector<16x1xf32>
    %14 = arith.divf %12, %13 : vector<16x1xf32>
    %15 = vector.broadcast %7 : vector<16x1xf32> to vector<16x32xf32>
    %16 = arith.subf %0, %15 : vector<16x32xf32>
    %cst_9 = arith.constant 9.99999974E-6 : f32
    %17 = vector.broadcast %cst_9 : f32 to vector<16x1xf32>
    %18 = arith.addf %14, %17 : vector<16x1xf32>
    %19 = math.rsqrt %18 : vector<16x1xf32>
    %20 = vector.broadcast %19 : vector<16x1xf32> to vector<16x32xf32>
    %21 = arith.mulf %16, %20 : vector<16x32xf32>
    %22 = vector.broadcast %2 : vector<1x32xf32> to vector<16x32xf32>
    %23 = arith.mulf %21, %22 : vector<16x32xf32>
    %24 = vector.broadcast %3 : vector<1x32xf32> to vector<16x32xf32>
    %25 = arith.addf %23, %24 : vector<16x32xf32>
    %c0_10 = arith.constant 0 : index
    %c0_11 = arith.constant 0 : index
    %c0_12 = arith.constant 0 : index
    %26 = vector.load %arg6[%c0_10, %c0_11, %c0_12] : memref<2x8x32xf32, #tpu.memory_space<vmem>>, vector<1x8x32xf32>
    %27 = vector.shape_cast %26 : vector<1x8x32xf32> to vector<8x32xf32>
    %28 = vector.extract_strided_slice %27 {offsets = [0, 0], sizes = [1, 32], strides = [1, 1]} : vector<8x32xf32> to vector<1x32xf32>
    %29 = vector.extract_strided_slice %27 {offsets = [1, 0], sizes = [1, 32], strides = [1, 1]} : vector<8x32xf32> to vector<1x32xf32>
    %30 = vector.extract_strided_slice %27 {offsets = [2, 0], sizes = [1, 32], strides = [1, 1]} : vector<8x32xf32> to vector<1x32xf32>
    %31 = vector.extract_strided_slice %27 {offsets = [3, 0], sizes = [1, 32], strides = [1, 1]} : vector<8x32xf32> to vector<1x32xf32>
    %32 = vector.extract_strided_slice %27 {offsets = [4, 0], sizes = [1, 32], strides = [1, 1]} : vector<8x32xf32> to vector<1x32xf32>
    %33 = vector.extract_strided_slice %27 {offsets = [5, 0], sizes = [1, 32], strides = [1, 1]} : vector<8x32xf32> to vector<1x32xf32>
    %c0_13 = arith.constant 0 : index
    %c0_14 = arith.constant 0 : index
    %c0_15 = arith.constant 0 : index
    %34 = vector.load %arg3[%c0_13, %c0_14, %c0_15] : memref<12x32x16xf32, #tpu.memory_space<vmem>>, vector<1x32x16xf32>
    %35 = vector.shape_cast %34 : vector<1x32x16xf32> to vector<32x16xf32>
    %cst_16 = arith.constant dense<0.000000e+00> : vector<16x16xf32>
    %36 = tpu.matmul %25, %35, %cst_16 {dimension_numbers = #tpu.dot_dimension_numbers<[1], [0], [0], [1], [0, 0, 1, 1], [], []>} : vector<16x32xf32>, vector<32x16xf32>, vector<16x16xf32> -> vector<16x16xf32>
    %c0_17 = arith.constant 0 : index
    %c0_18 = arith.constant 0 : index
    %c0_19 = arith.constant 0 : index
    %37 = vector.load %arg4[%c0_17, %c0_18, %c0_19] : memref<12x1x16xf32, #tpu.memory_space<vmem>>, vector<1x1x16xf32>
    %38 = vector.shape_cast %37 : vector<1x1x16xf32> to vector<1x16xf32>
    %39 = vector.broadcast %38 : vector<1x16xf32> to vector<16x16xf32>
    %40 = arith.addf %36, %39 : vector<16x16xf32>
    %c2 = arith.constant 2 : index
    %c0_20 = arith.constant 0 : index
    %c0_21 = arith.constant 0 : index
    %41 = vector.load %arg3[%c2, %c0_20, %c0_21] : memref<12x32x16xf32, #tpu.memory_space<vmem>>, vector<1x32x16xf32>
    %42 = vector.shape_cast %41 : vector<1x32x16xf32> to vector<32x16xf32>
    %cst_22 = arith.constant dense<0.000000e+00> : vector<16x16xf32>
    %43 = tpu.matmul %25, %42, %cst_22 {dimension_numbers = #tpu.dot_dimension_numbers<[1], [0], [0], [1], [0, 0, 1, 1], [], []>} : vector<16x32xf32>, vector<32x16xf32>, vector<16x16xf32> -> vector<16x16xf32>
    %c2_23 = arith.constant 2 : index
    %c0_24 = arith.constant 0 : index
    %c0_25 = arith.constant 0 : index
    %44 = vector.load %arg4[%c2_23, %c0_24, %c0_25] : memref<12x1x16xf32, #tpu.memory_space<vmem>>, vector<1x1x16xf32>
    %45 = vector.shape_cast %44 : vector<1x1x16xf32> to vector<1x16xf32>
    %46 = vector.broadcast %45 : vector<1x16xf32> to vector<16x16xf32>
    %47 = arith.addf %43, %46 : vector<16x16xf32>
    %c4 = arith.constant 4 : index
    %c0_26 = arith.constant 0 : index
    %c0_27 = arith.constant 0 : index
    %48 = vector.load %arg3[%c4, %c0_26, %c0_27] : memref<12x32x16xf32, #tpu.memory_space<vmem>>, vector<1x32x16xf32>
    %49 = vector.shape_cast %48 : vector<1x32x16xf32> to vector<32x16xf32>
    %cst_28 = arith.constant dense<0.000000e+00> : vector<16x16xf32>
    %50 = tpu.matmul %25, %49, %cst_28 {dimension_numbers = #tpu.dot_dimension_numbers<[1], [0], [0], [1], [0, 0, 1, 1], [], []>} : vector<16x32xf32>, vector<32x16xf32>, vector<16x16xf32> -> vector<16x16xf32>
    %c4_29 = arith.constant 4 : index
    %c0_30 = arith.constant 0 : index
    %c0_31 = arith.constant 0 : index
    %51 = vector.load %arg4[%c4_29, %c0_30, %c0_31] : memref<12x1x16xf32, #tpu.memory_space<vmem>>, vector<1x1x16xf32>
    %52 = vector.shape_cast %51 : vector<1x1x16xf32> to vector<1x16xf32>
    %53 = vector.broadcast %52 : vector<1x16xf32> to vector<16x16xf32>
    %54 = arith.addf %50, %53 : vector<16x16xf32>
    %cst_32 = arith.constant dense<0.000000e+00> : vector<16x16xf32>
    %55 = tpu.matmul %40, %47, %cst_32 {dimension_numbers = #tpu.dot_dimension_numbers<[1], [1], [0], [0], [0, 0, 1, 0], [], []>} : vector<16x16xf32>, vector<16x16xf32>, vector<16x16xf32> -> vector<16x16xf32>
    %cst_33 = arith.constant 2.500000e-01 : f32
    %56 = vector.broadcast %cst_33 : f32 to vector<16x16xf32>
    %57 = arith.mulf %55, %56 : vector<16x16xf32>
    %58 = arith.addf %57, %1 : vector<16x16xf32>
    %cst_34 = arith.constant dense<0xFF800000> : vector<16xf32>
    %59 = vector.multi_reduction <maximumf>, %58, %cst_34 [1] : vector<16x16xf32> to vector<16xf32>
    %60 = vector.shape_cast %59 : vector<16xf32> to vector<16x1xf32>
    %61 = vector.broadcast %60 : vector<16x1xf32> to vector<16x16xf32>
    %62 = arith.subf %58, %61 : vector<16x16xf32>
    %63 = math.exp %62 : vector<16x16xf32>
    %cst_35 = arith.constant dense<0.000000e+00> : vector<16xf32>
    %64 = vector.multi_reduction <add>, %63, %cst_35 [1] : vector<16x16xf32> to vector<16xf32>
    %65 = vector.shape_cast %64 : vector<16xf32> to vector<16x1xf32>
    %66 = tpu.reciprocal %65 {approx = true} : vector<16x1xf32> -> vector<16x1xf32>
    %67 = vector.broadcast %66 : vector<16x1xf32> to vector<16x16xf32>
    %68 = arith.mulf %63, %67 : vector<16x16xf32>
    %cst_36 = arith.constant dense<0.000000e+00> : vector<16x16xf32>
    %69 = tpu.matmul %68, %54, %cst_36 {dimension_numbers = #tpu.dot_dimension_numbers<[1], [0], [0], [1], [0, 0, 1, 1], [], []>} : vector<16x16xf32>, vector<16x16xf32>, vector<16x16xf32> -> vector<16x16xf32>
    %c0_37 = arith.constant 0 : index
    %c0_38 = arith.constant 0 : index
    %c0_39 = arith.constant 0 : index
    %70 = vector.load %arg5[%c0_37, %c0_38, %c0_39] : memref<4x16x32xf32, #tpu.memory_space<vmem>>, vector<1x16x32xf32>
    %71 = vector.shape_cast %70 : vector<1x16x32xf32> to vector<16x32xf32>
    %cst_40 = arith.constant dense<0.000000e+00> : vector<16x32xf32>
    %72 = tpu.matmul %69, %71, %cst_40 {dimension_numbers = #tpu.dot_dimension_numbers<[1], [0], [0], [1], [0, 0, 1, 1], [], []>} : vector<16x16xf32>, vector<16x32xf32>, vector<16x32xf32> -> vector<16x32xf32>
    %c1_41 = arith.constant 1 : index
    %c0_42 = arith.constant 0 : index
    %c0_43 = arith.constant 0 : index
    %73 = vector.load %arg3[%c1_41, %c0_42, %c0_43] : memref<12x32x16xf32, #tpu.memory_space<vmem>>, vector<1x32x16xf32>
    %74 = vector.shape_cast %73 : vector<1x32x16xf32> to vector<32x16xf32>
    %cst_44 = arith.constant dense<0.000000e+00> : vector<16x16xf32>
    %75 = tpu.matmul %25, %74, %cst_44 {dimension_numbers = #tpu.dot_dimension_numbers<[1], [0], [0], [1], [0, 0, 1, 1], [], []>} : vector<16x32xf32>, vector<32x16xf32>, vector<16x16xf32> -> vector<16x16xf32>
    %c1_45 = arith.constant 1 : index
    %c0_46 = arith.constant 0 : index
    %c0_47 = arith.constant 0 : index
    %76 = vector.load %arg4[%c1_45, %c0_46, %c0_47] : memref<12x1x16xf32, #tpu.memory_space<vmem>>, vector<1x1x16xf32>
    %77 = vector.shape_cast %76 : vector<1x1x16xf32> to vector<1x16xf32>
    %78 = vector.broadcast %77 : vector<1x16xf32> to vector<16x16xf32>
    %79 = arith.addf %75, %78 : vector<16x16xf32>
    %c3 = arith.constant 3 : index
    %c0_48 = arith.constant 0 : index
    %c0_49 = arith.constant 0 : index
    %80 = vector.load %arg3[%c3, %c0_48, %c0_49] : memref<12x32x16xf32, #tpu.memory_space<vmem>>, vector<1x32x16xf32>
    %81 = vector.shape_cast %80 : vector<1x32x16xf32> to vector<32x16xf32>
    %cst_50 = arith.constant dense<0.000000e+00> : vector<16x16xf32>
    %82 = tpu.matmul %25, %81, %cst_50 {dimension_numbers = #tpu.dot_dimension_numbers<[1], [0], [0], [1], [0, 0, 1, 1], [], []>} : vector<16x32xf32>, vector<32x16xf32>, vector<16x16xf32> -> vector<16x16xf32>
    %c3_51 = arith.constant 3 : index
    %c0_52 = arith.constant 0 : index
    %c0_53 = arith.constant 0 : index
    %83 = vector.load %arg4[%c3_51, %c0_52, %c0_53] : memref<12x1x16xf32, #tpu.memory_space<vmem>>, vector<1x1x16xf32>
    %84 = vector.shape_cast %83 : vector<1x1x16xf32> to vector<1x16xf32>
    %85 = vector.broadcast %84 : vector<1x16xf32> to vector<16x16xf32>
    %86 = arith.addf %82, %85 : vector<16x16xf32>
    %c5 = arith.constant 5 : index
    %c0_54 = arith.constant 0 : index
    %c0_55 = arith.constant 0 : index
    %87 = vector.load %arg3[%c5, %c0_54, %c0_55] : memref<12x32x16xf32, #tpu.memory_space<vmem>>, vector<1x32x16xf32>
    %88 = vector.shape_cast %87 : vector<1x32x16xf32> to vector<32x16xf32>
    %cst_56 = arith.constant dense<0.000000e+00> : vector<16x16xf32>
    %89 = tpu.matmul %25, %88, %cst_56 {dimension_numbers = #tpu.dot_dimension_numbers<[1], [0], [0], [1], [0, 0, 1, 1], [], []>} : vector<16x32xf32>, vector<32x16xf32>, vector<16x16xf32> -> vector<16x16xf32>
    %c5_57 = arith.constant 5 : index
    %c0_58 = arith.constant 0 : index
    %c0_59 = arith.constant 0 : index
    %90 = vector.load %arg4[%c5_57, %c0_58, %c0_59] : memref<12x1x16xf32, #tpu.memory_space<vmem>>, vector<1x1x16xf32>
    %91 = vector.shape_cast %90 : vector<1x1x16xf32> to vector<1x16xf32>
    %92 = vector.broadcast %91 : vector<1x16xf32> to vector<16x16xf32>
    %93 = arith.addf %89, %92 : vector<16x16xf32>
    %cst_60 = arith.constant dense<0.000000e+00> : vector<16x16xf32>
    %94 = tpu.matmul %79, %86, %cst_60 {dimension_numbers = #tpu.dot_dimension_numbers<[1], [1], [0], [0], [0, 0, 1, 0], [], []>} : vector<16x16xf32>, vector<16x16xf32>, vector<16x16xf32> -> vector<16x16xf32>
    %cst_61 = arith.constant 2.500000e-01 : f32
    %95 = vector.broadcast %cst_61 : f32 to vector<16x16xf32>
    %96 = arith.mulf %94, %95 : vector<16x16xf32>
    %97 = arith.addf %96, %1 : vector<16x16xf32>
    %cst_62 = arith.constant dense<0xFF800000> : vector<16xf32>
    %98 = vector.multi_reduction <maximumf>, %97, %cst_62 [1] : vector<16x16xf32> to vector<16xf32>
    %99 = vector.shape_cast %98 : vector<16xf32> to vector<16x1xf32>
    %100 = vector.broadcast %99 : vector<16x1xf32> to vector<16x16xf32>
    %101 = arith.subf %97, %100 : vector<16x16xf32>
    %102 = math.exp %101 : vector<16x16xf32>
    %cst_63 = arith.constant dense<0.000000e+00> : vector<16xf32>
    %103 = vector.multi_reduction <add>, %102, %cst_63 [1] : vector<16x16xf32> to vector<16xf32>
    %104 = vector.shape_cast %103 : vector<16xf32> to vector<16x1xf32>
    %105 = tpu.reciprocal %104 {approx = true} : vector<16x1xf32> -> vector<16x1xf32>
    %106 = vector.broadcast %105 : vector<16x1xf32> to vector<16x16xf32>
    %107 = arith.mulf %102, %106 : vector<16x16xf32>
    %cst_64 = arith.constant dense<0.000000e+00> : vector<16x16xf32>
    %108 = tpu.matmul %107, %93, %cst_64 {dimension_numbers = #tpu.dot_dimension_numbers<[1], [0], [0], [1], [0, 0, 1, 1], [], []>} : vector<16x16xf32>, vector<16x16xf32>, vector<16x16xf32> -> vector<16x16xf32>
    %c1_65 = arith.constant 1 : index
    %c0_66 = arith.constant 0 : index
    %c0_67 = arith.constant 0 : index
    %109 = vector.load %arg5[%c1_65, %c0_66, %c0_67] : memref<4x16x32xf32, #tpu.memory_space<vmem>>, vector<1x16x32xf32>
    %110 = vector.shape_cast %109 : vector<1x16x32xf32> to vector<16x32xf32>
    %cst_68 = arith.constant dense<0.000000e+00> : vector<16x32xf32>
    %111 = tpu.matmul %108, %110, %cst_68 {dimension_numbers = #tpu.dot_dimension_numbers<[1], [0], [0], [1], [0, 0, 1, 1], [], []>} : vector<16x16xf32>, vector<16x32xf32>, vector<16x32xf32> -> vector<16x32xf32>
    %112 = arith.addf %72, %111 : vector<16x32xf32>
    %113 = arith.addf %25, %112 : vector<16x32xf32>
    %114 = vector.broadcast %28 : vector<1x32xf32> to vector<16x32xf32>
    %115 = arith.addf %113, %114 : vector<16x32xf32>
    %cst_69 = arith.constant dense<0.000000e+00> : vector<16xf32>
    %116 = vector.multi_reduction <add>, %115, %cst_69 [1] : vector<16x32xf32> to vector<16xf32>
    %117 = vector.shape_cast %116 : vector<16xf32> to vector<16x1xf32>
    %cst_70 = arith.constant 3.200000e+01 : f32
    %118 = vector.broadcast %cst_70 : f32 to vector<16x1xf32>
    %119 = arith.divf %117, %118 : vector<16x1xf32>
    %120 = vector.broadcast %119 : vector<16x1xf32> to vector<16x32xf32>
    %121 = arith.subf %115, %120 : vector<16x32xf32>
    %122 = arith.mulf %121, %121 : vector<16x32xf32>
    %cst_71 = arith.constant dense<0.000000e+00> : vector<16xf32>
    %123 = vector.multi_reduction <add>, %122, %cst_71 [1] : vector<16x32xf32> to vector<16xf32>
    %124 = vector.shape_cast %123 : vector<16xf32> to vector<16x1xf32>
    %cst_72 = arith.constant 3.200000e+01 : f32
    %125 = vector.broadcast %cst_72 : f32 to vector<16x1xf32>
    %126 = arith.divf %124, %125 : vector<16x1xf32>
    %127 = vector.broadcast %119 : vector<16x1xf32> to vector<16x32xf32>
    %128 = arith.subf %115, %127 : vector<16x32xf32>
    %cst_73 = arith.constant 9.99999974E-6 : f32
    %129 = vector.broadcast %cst_73 : f32 to vector<16x1xf32>
    %130 = arith.addf %126, %129 : vector<16x1xf32>
    %131 = math.rsqrt %130 : vector<16x1xf32>
    %132 = vector.broadcast %131 : vector<16x1xf32> to vector<16x32xf32>
    %133 = arith.mulf %128, %132 : vector<16x32xf32>
    %134 = vector.broadcast %29 : vector<1x32xf32> to vector<16x32xf32>
    %135 = arith.mulf %133, %134 : vector<16x32xf32>
    %136 = vector.broadcast %30 : vector<1x32xf32> to vector<16x32xf32>
    %137 = arith.addf %135, %136 : vector<16x32xf32>
    %c0_74 = arith.constant 0 : index
    %c0_75 = arith.constant 0 : index
    %c0_76 = arith.constant 0 : index
    %138 = vector.load %arg7[%c0_74, %c0_75, %c0_76] : memref<2x32x128xf32, #tpu.memory_space<vmem>>, vector<1x32x128xf32>
    %139 = vector.shape_cast %138 : vector<1x32x128xf32> to vector<32x128xf32>
    %cst_77 = arith.constant dense<0.000000e+00> : vector<16x128xf32>
    %140 = tpu.matmul %137, %139, %cst_77 {dimension_numbers = #tpu.dot_dimension_numbers<[1], [0], [0], [1], [0, 0, 1, 1], [], []>} : vector<16x32xf32>, vector<32x128xf32>, vector<16x128xf32> -> vector<16x128xf32>
    %c0_78 = arith.constant 0 : index
    %c0_79 = arith.constant 0 : index
    %c0_80 = arith.constant 0 : index
    %141 = vector.load %arg8[%c0_78, %c0_79, %c0_80] : memref<2x1x128xf32, #tpu.memory_space<vmem>>, vector<1x1x128xf32>
    %142 = vector.shape_cast %141 : vector<1x1x128xf32> to vector<1x128xf32>
    %143 = vector.broadcast %142 : vector<1x128xf32> to vector<16x128xf32>
    %144 = arith.addf %140, %143 : vector<16x128xf32>
    %145 = arith.mulf %144, %144 : vector<16x128xf32>
    %146 = arith.mulf %144, %145 : vector<16x128xf32>
    %cst_81 = arith.constant 4.471500e-02 : f32
    %147 = vector.broadcast %cst_81 : f32 to vector<16x128xf32>
    %148 = arith.mulf %147, %146 : vector<16x128xf32>
    %149 = arith.addf %144, %148 : vector<16x128xf32>
    %cst_82 = arith.constant 0.797884583 : f32
    %150 = vector.broadcast %cst_82 : f32 to vector<16x128xf32>
    %151 = arith.mulf %150, %149 : vector<16x128xf32>
    %152 = math.tanh %151 : vector<16x128xf32>
    %cst_83 = arith.constant 1.000000e+00 : f32
    %153 = vector.broadcast %cst_83 : f32 to vector<16x128xf32>
    %154 = arith.addf %153, %152 : vector<16x128xf32>
    %cst_84 = arith.constant 5.000000e-01 : f32
    %155 = vector.broadcast %cst_84 : f32 to vector<16x128xf32>
    %156 = arith.mulf %155, %154 : vector<16x128xf32>
    %157 = arith.mulf %144, %156 : vector<16x128xf32>
    %c0_85 = arith.constant 0 : index
    %c0_86 = arith.constant 0 : index
    %c0_87 = arith.constant 0 : index
    %158 = vector.load %arg9[%c0_85, %c0_86, %c0_87] : memref<2x128x32xf32, #tpu.memory_space<vmem>>, vector<1x128x32xf32>
    %159 = vector.shape_cast %158 : vector<1x128x32xf32> to vector<128x32xf32>
    %cst_88 = arith.constant dense<0.000000e+00> : vector<16x32xf32>
    %160 = tpu.matmul %157, %159, %cst_88 {dimension_numbers = #tpu.dot_dimension_numbers<[1], [0], [0], [1], [0, 0, 1, 1], [], []>} : vector<16x128xf32>, vector<128x32xf32>, vector<16x32xf32> -> vector<16x32xf32>
    %161 = vector.broadcast %31 : vector<1x32xf32> to vector<16x32xf32>
    %162 = arith.addf %160, %161 : vector<16x32xf32>
    %163 = arith.addf %137, %162 : vector<16x32xf32>
    %cst_89 = arith.constant dense<0.000000e+00> : vector<16xf32>
    %164 = vector.multi_reduction <add>, %163, %cst_89 [1] : vector<16x32xf32> to vector<16xf32>
    %165 = vector.shape_cast %164 : vector<16xf32> to vector<16x1xf32>
    %cst_90 = arith.constant 3.200000e+01 : f32
    %166 = vector.broadcast %cst_90 : f32 to vector<16x1xf32>
    %167 = arith.divf %165, %166 : vector<16x1xf32>
    %168 = vector.broadcast %167 : vector<16x1xf32> to vector<16x32xf32>
    %169 = arith.subf %163, %168 : vector<16x32xf32>
    %170 = arith.mulf %169, %169 : vector<16x32xf32>
    %cst_91 = arith.constant dense<0.000000e+00> : vector<16xf32>
    %171 = vector.multi_reduction <add>, %170, %cst_91 [1] : vector<16x32xf32> to vector<16xf32>
    %172 = vector.shape_cast %171 : vector<16xf32> to vector<16x1xf32>
    %cst_92 = arith.constant 3.200000e+01 : f32
    %173 = vector.broadcast %cst_92 : f32 to vector<16x1xf32>
    %174 = arith.divf %172, %173 : vector<16x1xf32>
    %175 = vector.broadcast %167 : vector<16x1xf32> to vector<16x32xf32>
    %176 = arith.subf %163, %175 : vector<16x32xf32>
    %cst_93 = arith.constant 9.99999974E-6 : f32
    %177 = vector.broadcast %cst_93 : f32 to vector<16x1xf32>
    %178 = arith.addf %174, %177 : vector<16x1xf32>
    %179 = math.rsqrt %178 : vector<16x1xf32>
    %180 = vector.broadcast %179 : vector<16x1xf32> to vector<16x32xf32>
    %181 = arith.mulf %176, %180 : vector<16x32xf32>
    %182 = vector.broadcast %32 : vector<1x32xf32> to vector<16x32xf32>
    %183 = arith.mulf %181, %182 : vector<16x32xf32>
    %184 = vector.broadcast %33 : vector<1x32xf32> to vector<16x32xf32>
    %185 = arith.addf %183, %184 : vector<16x32xf32>
    %c1_94 = arith.constant 1 : index
    %c0_95 = arith.constant 0 : index
    %c0_96 = arith.constant 0 : index
    %186 = vector.load %arg6[%c1_94, %c0_95, %c0_96] : memref<2x8x32xf32, #tpu.memory_space<vmem>>, vector<1x8x32xf32>
    %187 = vector.shape_cast %186 : vector<1x8x32xf32> to vector<8x32xf32>
    %188 = vector.extract_strided_slice %187 {offsets = [0, 0], sizes = [1, 32], strides = [1, 1]} : vector<8x32xf32> to vector<1x32xf32>
    %189 = vector.extract_strided_slice %187 {offsets = [1, 0], sizes = [1, 32], strides = [1, 1]} : vector<8x32xf32> to vector<1x32xf32>
    %190 = vector.extract_strided_slice %187 {offsets = [2, 0], sizes = [1, 32], strides = [1, 1]} : vector<8x32xf32> to vector<1x32xf32>
    %191 = vector.extract_strided_slice %187 {offsets = [3, 0], sizes = [1, 32], strides = [1, 1]} : vector<8x32xf32> to vector<1x32xf32>
    %192 = vector.extract_strided_slice %187 {offsets = [4, 0], sizes = [1, 32], strides = [1, 1]} : vector<8x32xf32> to vector<1x32xf32>
    %193 = vector.extract_strided_slice %187 {offsets = [5, 0], sizes = [1, 32], strides = [1, 1]} : vector<8x32xf32> to vector<1x32xf32>
    %c6 = arith.constant 6 : index
    %c0_97 = arith.constant 0 : index
    %c0_98 = arith.constant 0 : index
    %194 = vector.load %arg3[%c6, %c0_97, %c0_98] : memref<12x32x16xf32, #tpu.memory_space<vmem>>, vector<1x32x16xf32>
    %195 = vector.shape_cast %194 : vector<1x32x16xf32> to vector<32x16xf32>
    %cst_99 = arith.constant dense<0.000000e+00> : vector<16x16xf32>
    %196 = tpu.matmul %185, %195, %cst_99 {dimension_numbers = #tpu.dot_dimension_numbers<[1], [0], [0], [1], [0, 0, 1, 1], [], []>} : vector<16x32xf32>, vector<32x16xf32>, vector<16x16xf32> -> vector<16x16xf32>
    %c6_100 = arith.constant 6 : index
    %c0_101 = arith.constant 0 : index
    %c0_102 = arith.constant 0 : index
    %197 = vector.load %arg4[%c6_100, %c0_101, %c0_102] : memref<12x1x16xf32, #tpu.memory_space<vmem>>, vector<1x1x16xf32>
    %198 = vector.shape_cast %197 : vector<1x1x16xf32> to vector<1x16xf32>
    %199 = vector.broadcast %198 : vector<1x16xf32> to vector<16x16xf32>
    %200 = arith.addf %196, %199 : vector<16x16xf32>
    %c8 = arith.constant 8 : index
    %c0_103 = arith.constant 0 : index
    %c0_104 = arith.constant 0 : index
    %201 = vector.load %arg3[%c8, %c0_103, %c0_104] : memref<12x32x16xf32, #tpu.memory_space<vmem>>, vector<1x32x16xf32>
    %202 = vector.shape_cast %201 : vector<1x32x16xf32> to vector<32x16xf32>
    %cst_105 = arith.constant dense<0.000000e+00> : vector<16x16xf32>
    %203 = tpu.matmul %185, %202, %cst_105 {dimension_numbers = #tpu.dot_dimension_numbers<[1], [0], [0], [1], [0, 0, 1, 1], [], []>} : vector<16x32xf32>, vector<32x16xf32>, vector<16x16xf32> -> vector<16x16xf32>
    %c8_106 = arith.constant 8 : index
    %c0_107 = arith.constant 0 : index
    %c0_108 = arith.constant 0 : index
    %204 = vector.load %arg4[%c8_106, %c0_107, %c0_108] : memref<12x1x16xf32, #tpu.memory_space<vmem>>, vector<1x1x16xf32>
    %205 = vector.shape_cast %204 : vector<1x1x16xf32> to vector<1x16xf32>
    %206 = vector.broadcast %205 : vector<1x16xf32> to vector<16x16xf32>
    %207 = arith.addf %203, %206 : vector<16x16xf32>
    %c10 = arith.constant 10 : index
    %c0_109 = arith.constant 0 : index
    %c0_110 = arith.constant 0 : index
    %208 = vector.load %arg3[%c10, %c0_109, %c0_110] : memref<12x32x16xf32, #tpu.memory_space<vmem>>, vector<1x32x16xf32>
    %209 = vector.shape_cast %208 : vector<1x32x16xf32> to vector<32x16xf32>
    %cst_111 = arith.constant dense<0.000000e+00> : vector<16x16xf32>
    %210 = tpu.matmul %185, %209, %cst_111 {dimension_numbers = #tpu.dot_dimension_numbers<[1], [0], [0], [1], [0, 0, 1, 1], [], []>} : vector<16x32xf32>, vector<32x16xf32>, vector<16x16xf32> -> vector<16x16xf32>
    %c10_112 = arith.constant 10 : index
    %c0_113 = arith.constant 0 : index
    %c0_114 = arith.constant 0 : index
    %211 = vector.load %arg4[%c10_112, %c0_113, %c0_114] : memref<12x1x16xf32, #tpu.memory_space<vmem>>, vector<1x1x16xf32>
    %212 = vector.shape_cast %211 : vector<1x1x16xf32> to vector<1x16xf32>
    %213 = vector.broadcast %212 : vector<1x16xf32> to vector<16x16xf32>
    %214 = arith.addf %210, %213 : vector<16x16xf32>
    %cst_115 = arith.constant dense<0.000000e+00> : vector<16x16xf32>
    %215 = tpu.matmul %200, %207, %cst_115 {dimension_numbers = #tpu.dot_dimension_numbers<[1], [1], [0], [0], [0, 0, 1, 0], [], []>} : vector<16x16xf32>, vector<16x16xf32>, vector<16x16xf32> -> vector<16x16xf32>
    %cst_116 = arith.constant 2.500000e-01 : f32
    %216 = vector.broadcast %cst_116 : f32 to vector<16x16xf32>
    %217 = arith.mulf %215, %216 : vector<16x16xf32>
    %218 = arith.addf %217, %1 : vector<16x16xf32>
    %cst_117 = arith.constant dense<0xFF800000> : vector<16xf32>
    %219 = vector.multi_reduction <maximumf>, %218, %cst_117 [1] : vector<16x16xf32> to vector<16xf32>
    %220 = vector.shape_cast %219 : vector<16xf32> to vector<16x1xf32>
    %221 = vector.broadcast %220 : vector<16x1xf32> to vector<16x16xf32>
    %222 = arith.subf %218, %221 : vector<16x16xf32>
    %223 = math.exp %222 : vector<16x16xf32>
    %cst_118 = arith.constant dense<0.000000e+00> : vector<16xf32>
    %224 = vector.multi_reduction <add>, %223, %cst_118 [1] : vector<16x16xf32> to vector<16xf32>
    %225 = vector.shape_cast %224 : vector<16xf32> to vector<16x1xf32>
    %226 = tpu.reciprocal %225 {approx = true} : vector<16x1xf32> -> vector<16x1xf32>
    %227 = vector.broadcast %226 : vector<16x1xf32> to vector<16x16xf32>
    %228 = arith.mulf %223, %227 : vector<16x16xf32>
    %cst_119 = arith.constant dense<0.000000e+00> : vector<16x16xf32>
    %229 = tpu.matmul %228, %214, %cst_119 {dimension_numbers = #tpu.dot_dimension_numbers<[1], [0], [0], [1], [0, 0, 1, 1], [], []>} : vector<16x16xf32>, vector<16x16xf32>, vector<16x16xf32> -> vector<16x16xf32>
    %c2_120 = arith.constant 2 : index
    %c0_121 = arith.constant 0 : index
    %c0_122 = arith.constant 0 : index
    %230 = vector.load %arg5[%c2_120, %c0_121, %c0_122] : memref<4x16x32xf32, #tpu.memory_space<vmem>>, vector<1x16x32xf32>
    %231 = vector.shape_cast %230 : vector<1x16x32xf32> to vector<16x32xf32>
    %cst_123 = arith.constant dense<0.000000e+00> : vector<16x32xf32>
    %232 = tpu.matmul %229, %231, %cst_123 {dimension_numbers = #tpu.dot_dimension_numbers<[1], [0], [0], [1], [0, 0, 1, 1], [], []>} : vector<16x16xf32>, vector<16x32xf32>, vector<16x32xf32> -> vector<16x32xf32>
    %c7 = arith.constant 7 : index
    %c0_124 = arith.constant 0 : index
    %c0_125 = arith.constant 0 : index
    %233 = vector.load %arg3[%c7, %c0_124, %c0_125] : memref<12x32x16xf32, #tpu.memory_space<vmem>>, vector<1x32x16xf32>
    %234 = vector.shape_cast %233 : vector<1x32x16xf32> to vector<32x16xf32>
    %cst_126 = arith.constant dense<0.000000e+00> : vector<16x16xf32>
    %235 = tpu.matmul %185, %234, %cst_126 {dimension_numbers = #tpu.dot_dimension_numbers<[1], [0], [0], [1], [0, 0, 1, 1], [], []>} : vector<16x32xf32>, vector<32x16xf32>, vector<16x16xf32> -> vector<16x16xf32>
    %c7_127 = arith.constant 7 : index
    %c0_128 = arith.constant 0 : index
    %c0_129 = arith.constant 0 : index
    %236 = vector.load %arg4[%c7_127, %c0_128, %c0_129] : memref<12x1x16xf32, #tpu.memory_space<vmem>>, vector<1x1x16xf32>
    %237 = vector.shape_cast %236 : vector<1x1x16xf32> to vector<1x16xf32>
    %238 = vector.broadcast %237 : vector<1x16xf32> to vector<16x16xf32>
    %239 = arith.addf %235, %238 : vector<16x16xf32>
    %c9 = arith.constant 9 : index
    %c0_130 = arith.constant 0 : index
    %c0_131 = arith.constant 0 : index
    %240 = vector.load %arg3[%c9, %c0_130, %c0_131] : memref<12x32x16xf32, #tpu.memory_space<vmem>>, vector<1x32x16xf32>
    %241 = vector.shape_cast %240 : vector<1x32x16xf32> to vector<32x16xf32>
    %cst_132 = arith.constant dense<0.000000e+00> : vector<16x16xf32>
    %242 = tpu.matmul %185, %241, %cst_132 {dimension_numbers = #tpu.dot_dimension_numbers<[1], [0], [0], [1], [0, 0, 1, 1], [], []>} : vector<16x32xf32>, vector<32x16xf32>, vector<16x16xf32> -> vector<16x16xf32>
    %c9_133 = arith.constant 9 : index
    %c0_134 = arith.constant 0 : index
    %c0_135 = arith.constant 0 : index
    %243 = vector.load %arg4[%c9_133, %c0_134, %c0_135] : memref<12x1x16xf32, #tpu.memory_space<vmem>>, vector<1x1x16xf32>
    %244 = vector.shape_cast %243 : vector<1x1x16xf32> to vector<1x16xf32>
    %245 = vector.broadcast %244 : vector<1x16xf32> to vector<16x16xf32>
    %246 = arith.addf %242, %245 : vector<16x16xf32>
    %c11 = arith.constant 11 : index
    %c0_136 = arith.constant 0 : index
    %c0_137 = arith.constant 0 : index
    %247 = vector.load %arg3[%c11, %c0_136, %c0_137] : memref<12x32x16xf32, #tpu.memory_space<vmem>>, vector<1x32x16xf32>
    %248 = vector.shape_cast %247 : vector<1x32x16xf32> to vector<32x16xf32>
    %cst_138 = arith.constant dense<0.000000e+00> : vector<16x16xf32>
    %249 = tpu.matmul %185, %248, %cst_138 {dimension_numbers = #tpu.dot_dimension_numbers<[1], [0], [0], [1], [0, 0, 1, 1], [], []>} : vector<16x32xf32>, vector<32x16xf32>, vector<16x16xf32> -> vector<16x16xf32>
    %c11_139 = arith.constant 11 : index
    %c0_140 = arith.constant 0 : index
    %c0_141 = arith.constant 0 : index
    %250 = vector.load %arg4[%c11_139, %c0_140, %c0_141] : memref<12x1x16xf32, #tpu.memory_space<vmem>>, vector<1x1x16xf32>
    %251 = vector.shape_cast %250 : vector<1x1x16xf32> to vector<1x16xf32>
    %252 = vector.broadcast %251 : vector<1x16xf32> to vector<16x16xf32>
    %253 = arith.addf %249, %252 : vector<16x16xf32>
    %cst_142 = arith.constant dense<0.000000e+00> : vector<16x16xf32>
    %254 = tpu.matmul %239, %246, %cst_142 {dimension_numbers = #tpu.dot_dimension_numbers<[1], [1], [0], [0], [0, 0, 1, 0], [], []>} : vector<16x16xf32>, vector<16x16xf32>, vector<16x16xf32> -> vector<16x16xf32>
    %cst_143 = arith.constant 2.500000e-01 : f32
    %255 = vector.broadcast %cst_143 : f32 to vector<16x16xf32>
    %256 = arith.mulf %254, %255 : vector<16x16xf32>
    %257 = arith.addf %256, %1 : vector<16x16xf32>
    %cst_144 = arith.constant dense<0xFF800000> : vector<16xf32>
    %258 = vector.multi_reduction <maximumf>, %257, %cst_144 [1] : vector<16x16xf32> to vector<16xf32>
    %259 = vector.shape_cast %258 : vector<16xf32> to vector<16x1xf32>
    %260 = vector.broadcast %259 : vector<16x1xf32> to vector<16x16xf32>
    %261 = arith.subf %257, %260 : vector<16x16xf32>
    %262 = math.exp %261 : vector<16x16xf32>
    %cst_145 = arith.constant dense<0.000000e+00> : vector<16xf32>
    %263 = vector.multi_reduction <add>, %262, %cst_145 [1] : vector<16x16xf32> to vector<16xf32>
    %264 = vector.shape_cast %263 : vector<16xf32> to vector<16x1xf32>
    %265 = tpu.reciprocal %264 {approx = true} : vector<16x1xf32> -> vector<16x1xf32>
    %266 = vector.broadcast %265 : vector<16x1xf32> to vector<16x16xf32>
    %267 = arith.mulf %262, %266 : vector<16x16xf32>
    %cst_146 = arith.constant dense<0.000000e+00> : vector<16x16xf32>
    %268 = tpu.matmul %267, %253, %cst_146 {dimension_numbers = #tpu.dot_dimension_numbers<[1], [0], [0], [1], [0, 0, 1, 1], [], []>} : vector<16x16xf32>, vector<16x16xf32>, vector<16x16xf32> -> vector<16x16xf32>
    %c3_147 = arith.constant 3 : index
    %c0_148 = arith.constant 0 : index
    %c0_149 = arith.constant 0 : index
    %269 = vector.load %arg5[%c3_147, %c0_148, %c0_149] : memref<4x16x32xf32, #tpu.memory_space<vmem>>, vector<1x16x32xf32>
    %270 = vector.shape_cast %269 : vector<1x16x32xf32> to vector<16x32xf32>
    %cst_150 = arith.constant dense<0.000000e+00> : vector<16x32xf32>
    %271 = tpu.matmul %268, %270, %cst_150 {dimension_numbers = #tpu.dot_dimension_numbers<[1], [0], [0], [1], [0, 0, 1, 1], [], []>} : vector<16x16xf32>, vector<16x32xf32>, vector<16x32xf32> -> vector<16x32xf32>
    %272 = arith.addf %232, %271 : vector<16x32xf32>
    %273 = arith.addf %185, %272 : vector<16x32xf32>
    %274 = vector.broadcast %188 : vector<1x32xf32> to vector<16x32xf32>
    %275 = arith.addf %273, %274 : vector<16x32xf32>
    %cst_151 = arith.constant dense<0.000000e+00> : vector<16xf32>
    %276 = vector.multi_reduction <add>, %275, %cst_151 [1] : vector<16x32xf32> to vector<16xf32>
    %277 = vector.shape_cast %276 : vector<16xf32> to vector<16x1xf32>
    %cst_152 = arith.constant 3.200000e+01 : f32
    %278 = vector.broadcast %cst_152 : f32 to vector<16x1xf32>
    %279 = arith.divf %277, %278 : vector<16x1xf32>
    %280 = vector.broadcast %279 : vector<16x1xf32> to vector<16x32xf32>
    %281 = arith.subf %275, %280 : vector<16x32xf32>
    %282 = arith.mulf %281, %281 : vector<16x32xf32>
    %cst_153 = arith.constant dense<0.000000e+00> : vector<16xf32>
    %283 = vector.multi_reduction <add>, %282, %cst_153 [1] : vector<16x32xf32> to vector<16xf32>
    %284 = vector.shape_cast %283 : vector<16xf32> to vector<16x1xf32>
    %cst_154 = arith.constant 3.200000e+01 : f32
    %285 = vector.broadcast %cst_154 : f32 to vector<16x1xf32>
    %286 = arith.divf %284, %285 : vector<16x1xf32>
    %287 = vector.broadcast %279 : vector<16x1xf32> to vector<16x32xf32>
    %288 = arith.subf %275, %287 : vector<16x32xf32>
    %cst_155 = arith.constant 9.99999974E-6 : f32
    %289 = vector.broadcast %cst_155 : f32 to vector<16x1xf32>
    %290 = arith.addf %286, %289 : vector<16x1xf32>
    %291 = math.rsqrt %290 : vector<16x1xf32>
    %292 = vector.broadcast %291 : vector<16x1xf32> to vector<16x32xf32>
    %293 = arith.mulf %288, %292 : vector<16x32xf32>
    %294 = vector.broadcast %189 : vector<1x32xf32> to vector<16x32xf32>
    %295 = arith.mulf %293, %294 : vector<16x32xf32>
    %296 = vector.broadcast %190 : vector<1x32xf32> to vector<16x32xf32>
    %297 = arith.addf %295, %296 : vector<16x32xf32>
    %c1_156 = arith.constant 1 : index
    %c0_157 = arith.constant 0 : index
    %c0_158 = arith.constant 0 : index
    %298 = vector.load %arg7[%c1_156, %c0_157, %c0_158] : memref<2x32x128xf32, #tpu.memory_space<vmem>>, vector<1x32x128xf32>
    %299 = vector.shape_cast %298 : vector<1x32x128xf32> to vector<32x128xf32>
    %cst_159 = arith.constant dense<0.000000e+00> : vector<16x128xf32>
    %300 = tpu.matmul %297, %299, %cst_159 {dimension_numbers = #tpu.dot_dimension_numbers<[1], [0], [0], [1], [0, 0, 1, 1], [], []>} : vector<16x32xf32>, vector<32x128xf32>, vector<16x128xf32> -> vector<16x128xf32>
    %c1_160 = arith.constant 1 : index
    %c0_161 = arith.constant 0 : index
    %c0_162 = arith.constant 0 : index
    %301 = vector.load %arg8[%c1_160, %c0_161, %c0_162] : memref<2x1x128xf32, #tpu.memory_space<vmem>>, vector<1x1x128xf32>
    %302 = vector.shape_cast %301 : vector<1x1x128xf32> to vector<1x128xf32>
    %303 = vector.broadcast %302 : vector<1x128xf32> to vector<16x128xf32>
    %304 = arith.addf %300, %303 : vector<16x128xf32>
    %305 = arith.mulf %304, %304 : vector<16x128xf32>
    %306 = arith.mulf %304, %305 : vector<16x128xf32>
    %cst_163 = arith.constant 4.471500e-02 : f32
    %307 = vector.broadcast %cst_163 : f32 to vector<16x128xf32>
    %308 = arith.mulf %307, %306 : vector<16x128xf32>
    %309 = arith.addf %304, %308 : vector<16x128xf32>
    %cst_164 = arith.constant 0.797884583 : f32
    %310 = vector.broadcast %cst_164 : f32 to vector<16x128xf32>
    %311 = arith.mulf %310, %309 : vector<16x128xf32>
    %312 = math.tanh %311 : vector<16x128xf32>
    %cst_165 = arith.constant 1.000000e+00 : f32
    %313 = vector.broadcast %cst_165 : f32 to vector<16x128xf32>
    %314 = arith.addf %313, %312 : vector<16x128xf32>
    %cst_166 = arith.constant 5.000000e-01 : f32
    %315 = vector.broadcast %cst_166 : f32 to vector<16x128xf32>
    %316 = arith.mulf %315, %314 : vector<16x128xf32>
    %317 = arith.mulf %304, %316 : vector<16x128xf32>
    %c1_167 = arith.constant 1 : index
    %c0_168 = arith.constant 0 : index
    %c0_169 = arith.constant 0 : index
    %318 = vector.load %arg9[%c1_167, %c0_168, %c0_169] : memref<2x128x32xf32, #tpu.memory_space<vmem>>, vector<1x128x32xf32>
    %319 = vector.shape_cast %318 : vector<1x128x32xf32> to vector<128x32xf32>
    %cst_170 = arith.constant dense<0.000000e+00> : vector<16x32xf32>
    %320 = tpu.matmul %317, %319, %cst_170 {dimension_numbers = #tpu.dot_dimension_numbers<[1], [0], [0], [1], [0, 0, 1, 1], [], []>} : vector<16x128xf32>, vector<128x32xf32>, vector<16x32xf32> -> vector<16x32xf32>
    %321 = vector.broadcast %191 : vector<1x32xf32> to vector<16x32xf32>
    %322 = arith.addf %320, %321 : vector<16x32xf32>
    %323 = arith.addf %297, %322 : vector<16x32xf32>
    %cst_171 = arith.constant dense<0.000000e+00> : vector<16xf32>
    %324 = vector.multi_reduction <add>, %323, %cst_171 [1] : vector<16x32xf32> to vector<16xf32>
    %325 = vector.shape_cast %324 : vector<16xf32> to vector<16x1xf32>
    %cst_172 = arith.constant 3.200000e+01 : f32
    %326 = vector.broadcast %cst_172 : f32 to vector<16x1xf32>
    %327 = arith.divf %325, %326 : vector<16x1xf32>
    %328 = vector.broadcast %327 : vector<16x1xf32> to vector<16x32xf32>
    %329 = arith.subf %323, %328 : vector<16x32xf32>
    %330 = arith.mulf %329, %329 : vector<16x32xf32>
    %cst_173 = arith.constant dense<0.000000e+00> : vector<16xf32>
    %331 = vector.multi_reduction <add>, %330, %cst_173 [1] : vector<16x32xf32> to vector<16xf32>
    %332 = vector.shape_cast %331 : vector<16xf32> to vector<16x1xf32>
    %cst_174 = arith.constant 3.200000e+01 : f32
    %333 = vector.broadcast %cst_174 : f32 to vector<16x1xf32>
    %334 = arith.divf %332, %333 : vector<16x1xf32>
    %335 = vector.broadcast %327 : vector<16x1xf32> to vector<16x32xf32>
    %336 = arith.subf %323, %335 : vector<16x32xf32>
    %cst_175 = arith.constant 9.99999974E-6 : f32
    %337 = vector.broadcast %cst_175 : f32 to vector<16x1xf32>
    %338 = arith.addf %334, %337 : vector<16x1xf32>
    %339 = math.rsqrt %338 : vector<16x1xf32>
    %340 = vector.broadcast %339 : vector<16x1xf32> to vector<16x32xf32>
    %341 = arith.mulf %336, %340 : vector<16x32xf32>
    %342 = vector.broadcast %192 : vector<1x32xf32> to vector<16x32xf32>
    %343 = arith.mulf %341, %342 : vector<16x32xf32>
    %344 = vector.broadcast %193 : vector<1x32xf32> to vector<16x32xf32>
    %345 = arith.addf %343, %344 : vector<16x32xf32>
    %346 = vector.shape_cast %345 : vector<16x32xf32> to vector<2x8x32xf32>
    %347 = vector.extract_strided_slice %346 {offsets = [0, 0, 0], sizes = [2, 1, 32], strides = [1, 1, 1]} : vector<2x8x32xf32> to vector<2x1x32xf32>
    %348 = vector.shape_cast %347 : vector<2x1x32xf32> to vector<2x32xf32>
    %c0_176 = arith.constant 0 : index
    %c0_177 = arith.constant 0 : index
    %349 = vector.load %arg10[%c0_176, %c0_177] : memref<36x64xf32, #tpu.memory_space<vmem>>, vector<32x64xf32>
    %c32 = arith.constant 32 : index
    %c0_178 = arith.constant 0 : index
    %350 = vector.load %arg10[%c32, %c0_178] : memref<36x64xf32, #tpu.memory_space<vmem>>, vector<1x64xf32>
    %c33 = arith.constant 33 : index
    %c0_179 = arith.constant 0 : index
    %351 = vector.load %arg10[%c33, %c0_179] : memref<36x64xf32, #tpu.memory_space<vmem>>, vector<3x64xf32>
    %cst_180 = arith.constant dense<0.000000e+00> : vector<2x64xf32>
    %352 = tpu.matmul %348, %349, %cst_180 {dimension_numbers = #tpu.dot_dimension_numbers<[1], [0], [0], [1], [0, 0, 1, 1], [], []>} : vector<2x32xf32>, vector<32x64xf32>, vector<2x64xf32> -> vector<2x64xf32>
    %c0_181 = arith.constant 0 : index
    %c0_182 = arith.constant 0 : index
    %353 = vector.load %arg14[%c0_181, %c0_182] : memref<2x1xf32, #tpu.memory_space<vmem>>, vector<2x1xf32>
    %354 = vector.broadcast %353 : vector<2x1xf32> to vector<2x64xf32>
    %355 = vector.broadcast %350 : vector<1x64xf32> to vector<2x64xf32>
    %356 = arith.mulf %354, %355 : vector<2x64xf32>
    %357 = arith.addf %352, %356 : vector<2x64xf32>
    %c0_183 = arith.constant 0 : index
    %c0_184 = arith.constant 0 : index
    %358 = vector.load %arg15[%c0_183, %c0_184] : memref<2x3xf32, #tpu.memory_space<vmem>>, vector<2x3xf32>
    %cst_185 = arith.constant dense<0.000000e+00> : vector<2x64xf32>
    %359 = tpu.matmul %358, %351, %cst_185 {dimension_numbers = #tpu.dot_dimension_numbers<[1], [0], [0], [1], [0, 0, 1, 1], [], []>} : vector<2x3xf32>, vector<3x64xf32>, vector<2x64xf32> -> vector<2x64xf32>
    %360 = arith.addf %357, %359 : vector<2x64xf32>
    %c0_186 = arith.constant 0 : index
    %c0_187 = arith.constant 0 : index
    %361 = vector.load %arg11[%c0_186, %c0_187] : memref<1x64xf32, #tpu.memory_space<vmem>>, vector<1x64xf32>
    %362 = vector.broadcast %361 : vector<1x64xf32> to vector<2x64xf32>
    %363 = arith.addf %360, %362 : vector<2x64xf32>
    %cst_188 = arith.constant 0.000000e+00 : f32
    %364 = vector.broadcast %cst_188 : f32 to vector<2x64xf32>
    %365 = arith.maximumf %363, %364 : vector<2x64xf32>
    %c0_189 = arith.constant 0 : index
    %c0_190 = arith.constant 0 : index
    %366 = vector.load %arg12[%c0_189, %c0_190] : memref<64x128xf32, #tpu.memory_space<vmem>>, vector<64x128xf32>
    %cst_191 = arith.constant dense<0.000000e+00> : vector<2x128xf32>
    %367 = tpu.matmul %365, %366, %cst_191 {dimension_numbers = #tpu.dot_dimension_numbers<[1], [0], [0], [1], [0, 0, 1, 1], [], []>} : vector<2x64xf32>, vector<64x128xf32>, vector<2x128xf32> -> vector<2x128xf32>
    %c0_192 = arith.constant 0 : index
    %c0_193 = arith.constant 0 : index
    %368 = vector.load %arg13[%c0_192, %c0_193] : memref<1x128xf32, #tpu.memory_space<vmem>>, vector<1x128xf32>
    %369 = vector.broadcast %368 : vector<1x128xf32> to vector<2x128xf32>
    %370 = arith.addf %367, %369 : vector<2x128xf32>
    %c0_194 = arith.constant 0 : index
    %c0_195 = arith.constant 0 : index
    %371 = vector.load %arg16[%c0_194, %c0_195] : memref<2x128xf32, #tpu.memory_space<vmem>>, vector<2x128xf32>
    tpu.vector_store %arg16[%c0_194, %c0_195], %370 {strides = array<i32>} : memref<2x128xf32, #tpu.memory_space<vmem>>, vector<2x128xf32>,
    return
  }
}

</mosaic_0001>

<bundles_post_ra>
// kernel: run_fishbait.1
= control target key start
LH: loop header
LB: loop body
LE: loop exit
PB: predicated region body
PF: predicated region fallthrough
CT: control target
= control target key end

     0   :  { %vm59_vm0 = vcmask 261120   ;;  %vm368_vm1 = vcmask 130048   ;;  %vm4155_vm3 = vmmov 0   ;;  %vm2885_vm4 = vcmask 1041409   ;;  %s4886_s0 = inlined_call_operand.vmem [shape: f32[16,32], index: 0, kind: input, shape index: {}]   ;;  %s4887_s3 = inlined_call_operand.vmem [shape: f32[12,32,16], index: 3, kind: input, shape index: {}]   ;;  %s4888_s2 = inlined_call_operand.vmem [shape: f32[2,32], index: 2, kind: input, shape index: {}]   ;;  %s4889_s4 = inlined_call_operand.vmem [shape: f32[12,1,16], index: 4, kind: input, shape index: {}]   ;;  %s4890_s1 = inlined_call_operand.vmem [shape: f32[16,16], index: 1, kind: input, shape index: {}]   ;;  %s4891_s5 = inlined_call_operand.vmem [shape: f32[4,16,32], index: 5, kind: input, shape index: {}]   ;;  %s4892_s6 = inlined_call_operand.vmem [shape: f32[2,8,32], index: 6, kind: input, shape index: {}]   ;;  %s4893_s7 = inlined_call_operand.vmem [shape: f32[2,32,128], index: 7, kind: input, shape index: {}]   ;;  %s4894_s9 = inlined_call_operand.vmem [shape: f32[2,128,32], index: 9, kind: input, shape index: {}]   ;;  %s4895_s8 = inlined_call_operand.vmem [shape: f32[2,1,128], index: 8, kind: input, shape index: {}]   ;;  %s4896_s10 = inlined_call_operand.vmem [shape: f32[36,64], index: 10, kind: input, shape index: {}]   ;;  %s4897_s14 = inlined_call_operand.vmem [shape: f32[2,1], index: 14, kind: input, shape index: {}]   ;;  %s4898_s12 = inlined_call_operand.vmem [shape: f32[64,128], index: 12, kind: input, shape index: {}]   ;;  %s4899_s15 = inlined_call_operand.vmem [shape: f32[2,3], index: 15, kind: input, shape index: {}]   ;;  %s4900_s11 = inlined_call_operand.vmem [shape: f32[1,64], index: 11, kind: input, shape index: {}]   ;;  %s4901_s13 = inlined_call_operand.vmem [shape: f32[1,128], index: 13, kind: input, shape index: {}]   ;;  %s4902_s16 = inlined_call_operand.vmem [shape: f32[2,128], index: 16, kind: output, shape index: {}]  }
   0x1   :  { %4904 = sst [smem:[#allocation2_spill]] %s4886_s0  ;;  %v100_v14 = vld [vmem:[%s4887_s3] sm:$0xff]  ;;  %v101_v15 = vld [vmem:[%s4887_s3 + $0x8] sm:$0xff]  ;;  %v102_v20 = vld [vmem:[%s4887_s3 + $0x10] sm:$0xff]  ;;  %vm2964_vm5 = vcmask 1042432   ;;  %vm2960_vm6 = vcmask 23552  }
   0x2   :  { %s4905_s23 = sld [smem:[#allocation2_spill]]  ;;  %v3835_v16 = vpack.c.bf16 %v101_v15, %v100_v14  ;;  %v3147_v17 = vld [vmem:[%s4887_s3 + $0x40] sm:$0xff]  ;;  %v3148_v18 = vld [vmem:[%s4887_s3 + $0x48] sm:$0xff]  ;;  %v103_v21 = vld [vmem:[%s4887_s3 + $0x18] sm:$0xff]  ;;  %vm3063_vm7 = vcmask 523264  }
   0x3   :  { %v3843_v19 = vpack.c.bf16 %v3148_v18, %v3147_v17  ;;  %v3839_v22 = vpack.c.bf16 %v103_v21, %v102_v20  ;;  %v3149_v23 = vld [vmem:[%s4887_s3 + $0x50] sm:$0xff]  ;;  %v3150_v24 = vld [vmem:[%s4887_s3 + $0x58] sm:$0xff]  ;;  %v3155_v26 = vld [vmem:[%s4887_s3 + $0x80] sm:$0xff] }
   0x4   :  { %3836 = vmatprep.subr.bf16.mxu0 %v3835_v16  ;;  %v3847_v25 = vpack.c.bf16 %v3150_v24, %v3149_v23  ;;  %v3156_v27 = vld [vmem:[%s4887_s3 + $0x88] sm:$0xff]  ;;  %v3142_v36 = vld [vmem:[%s4888_s2] ss:$0 sm:$0xff]  ;;  %v3143_v38 = vld [vmem:[%s4888_s2 + $0x1] ss:$0 sm:$0xff] }
   0x5   :  { %3838 = vmatpush3.bf16.msra.mxu0 %v3835_v16  ;;  %3844 = vmatprep.subr.bf16.mxu1 %v3843_v19  ;;  %v3851_v28 = vpack.c.bf16 %v3156_v27, %v3155_v26  ;;  %v3157_v43 = vld [vmem:[%s4887_s3 + $0x90] sm:$0xff]  ;;  %v3158_v44 = vld [vmem:[%s4887_s3 + $0x98] sm:$0xff]  ;;  %v3152_v48 = vld [vmem:[%s4889_s4 + $0x2] ss:$0 sm:$0xff] }
   0x6   :  { %3846 = vmatpush3.bf16.msra.mxu1 %v3843_v19  ;;  %3840 = vmatprep.subr.bf16.mxu0 %v3839_v22  ;;  %v3855_v47 = vpack.c.bf16 %v3158_v44, %v3157_v43  ;;  %v3144_v49 = vld [vmem:[%s4889_s4] ss:$0 sm:$0xff]  ;;  %v3170_v56 = vld [vmem:[%s4887_s3 + $0x28] sm:$0xff]  ;;  %vm4325_vm2 = vmpackc.low %vm368_vm1, %vm368_vm1 }
   0x7   :  { %3848 = vmatprep.subr.bf16.mxu1 %v3847_v25  ;;  %v3169_v55 = vld [vmem:[%s4887_s3 + $0x20] sm:$0xff]  ;;  %v4367_v15 = vld [vmem:[%s4890_s1 + $0x8] sm:$0xff] }
   0x8   :  { %v53_v0 = vld [vmem:[%s4905_s23] sm:$0xff]  ;;  %v54_v1 = vld [vmem:[%s4905_s23 + $0x8] sm:$0xff]  ;;  %v3869_v61 = vpack.c.bf16 %v3170_v56, %v3169_v55 }
   0x9   :  { %v60_v2 = vsel %vm59_vm0, %v53_v0, 0.0  ;;  %v63_v3 = vsel %vm59_vm0, %v54_v1, 0.0  ;;  %3842 = vmatpush3.bf16.msra.mxu0 %v3839_v22  ;;  %v3160_v62 = vld [vmem:[%s4889_s4 + $0x4] ss:$0 sm:$0xff]  ;;  %v3174_v24 = vld [vmem:[%s4889_s4 + $0x1] ss:$0 sm:$0xff] }
   0xa   :  { %61 = vadd.xlane.f32.xlu0 %v60_v2  ;;  %3850 = vmatpush3.bf16.msra.mxu1 %v3847_v25  ;;  %v3171_v2 = vld [vmem:[%s4887_s3 + $0x30] sm:$0xff]  ;;  %v4372_v18 = vld [vmem:[%s4890_s1] sm:$0xff] }
   0xb   :  { %3852 = vmatprep.subr.bf16.mxu0 %v3851_v28 }
   0xe   :  { %64 = vadd.xlane.f32.xlu0 %v63_v3  ;;  %v3172_v3 = vld [vmem:[%s4887_s3 + $0x38] sm:$0xff] }
  0x97   :  { %v62_v4 = vpop.xlane.xlu0 %61 }
  0x98   :  { %v67_v5 = vmul.f32 0.03125, %v62_v4 }
  0x9a   :  { %v69_v6 = vsub.f32 %v53_v0, %v67_v5 }
  0x9b   :  { %v65_v7 = vpop.xlane.xlu0 %64 }
  0x9c   :  { %v68_v8 = vmul.f32 0.03125, %v65_v7  ;;  %v71_v9 = vmul.f32 %v69_v6, %v69_v6  ;;  %v3873_v7 = vpack.c.bf16 %v3172_v3, %v3171_v2 }
  0x9e   :  { %v70_v10 = vsub.f32 %v54_v1, %v68_v8  ;;  %v73_v11 = vsel %vm59_vm0, %v71_v9, 0.0  ;;  %v3185_v8 = vld [vmem:[%s4887_s3 + $0xa0] sm:$0xff]  ;;  %v3186_v9 = vld [vmem:[%s4887_s3 + $0xa8] sm:$0xff] }
  0x9f   :  { %74 = vadd.xlane.f32.xlu1 %v73_v11  ;;  %v3187_v11 = vld [vmem:[%s4887_s3 + $0xb0] sm:$0xff] }
  0xa0   :  { %v72_v12 = vmul.f32 %v70_v10, %v70_v10 }
  0xa2   :  { %v76_v13 = vsel %vm59_vm0, %v72_v12, 0.0  ;;  %v3188_v12 = vld [vmem:[%s4887_s3 + $0xb8] sm:$0xff] }
  0xa3   :  { %77 = vadd.xlane.f32.xlu1 %v76_v13  ;;  %v3889_v13 = vpack.c.bf16 %v3188_v12, %v3187_v11 }
 0x12c   :  { %v75_v29 = vpop.xlane.xlu1 %74 }
 0x12d   :  { %v79_v30 = vmul.f32 0.03125, %v75_v29 }
 0x12f   :  { %v81_v31 = vadd.f32 1e-05, %v79_v30 }
 0x130   :  { %v78_v32 = vpop.xlane.xlu1 %77 }
 0x131   :  { %4094 = vrsqrt.f32 %v81_v31  ;;  %v80_v33 = vmul.f32 0.03125, %v78_v32 }
 0x133   :  { %v82_v34 = vadd.f32 1e-05, %v80_v33 }
 0x135   :  { %4096 = vrsqrt.f32 %v82_v34 }
 0x13b   :  { %v4095_v35 = vpop.eup %4094 }
 0x13c   :  { %v85_v37 = vmul.f32 %v4095_v35, %v69_v6 }
 0x13e   :  { %v91_v39 = vmul.f32 %v3142_v36, %v85_v37 }
 0x13f   :  { %v4097_v40 = vpop.eup %4096 }
 0x140   :  { %v4289_v41 = vadd.f32 %v3143_v38, %v91_v39  ;;  %v86_v42 = vmul.f32 %v4097_v40, %v70_v10  ;;  %v3885_v10 = vpack.c.bf16 %v3186_v9, %v3185_v8 }
 0x142   :  { %v92_v45 = vmul.f32 %v3142_v36, %v86_v42  ;;  %3500 = vmatprep.mubr.msk.f32.mxu0 %vm59_vm0, %v4289_v41  ;;  %3511 = vmatprep.mubr.msk.f32.mxu1 %vm59_vm0, %v4289_v41 }
 0x144   :  { %v4301_v46 = vadd.f32 %v3143_v38, %v92_v45  ;;  %v3177_v45 = vld [vmem:[%s4887_s3 + $0x60] sm:$0xff] }
 0x146   :  { %3501 = vmatmul.mubr.msk.f32.vlgmr.msra.gmra.mrb[0].mxu0 %vm59_vm0, %v4301_v46  ;;  %3512 = vmatmul.mubr.msk.f32.vlgmr.msra.gmra.mrb[0].mxu1 %vm59_vm0, %v4301_v46 }
 0x147   :  { %3854 = vmatpush3.bf16.msra.mxu0 %v3851_v28  ;;  %3522 = vmatprep.mubr.msk.f32.mxu0 %vm59_vm0, %v4289_v41  ;;  %v3190_v28 = vld [vmem:[%s4889_s4 + $0x5] ss:$0 sm:$0xff] }
 0x148   :  { %3856 = vmatprep.subr.bf16.mxu0 %v3855_v47 }
 0x14b   :  { %3858 = vmatpush3.bf16.msra.mxu0 %v3855_v47  ;;  %v3178_v47 = vld [vmem:[%s4887_s3 + $0x68] sm:$0xff] }
 0x14e   :  { %3523 = vmatmul.mubr.msk.f32.vlgmr.msra.gmra.mrb[2].mxu0 %vm59_vm0, %v4301_v46 }
 0x219   :  { %v3502_v50 = vpop.f32.mrb[0].mxu0  ;;  %v3513_v51 = vpop.f32.mrb[0].mxu1 }
 0x21a   :  { %v277_v52 = vadd.f32 %v3513_v51, %v3152_v48  ;;  %v183_v53 = vpop.f32.mrb[1].mxu0  ;;  %v271_v54 = vpop.f32.mrb[1].mxu1  ;;  %v189_v5 = vadd.f32 %v3502_v50, %v3144_v49 }
 0x21b   :  { %v184_v57 = vadd.f32 %v3144_v49, %v183_v53  ;;  %v272_v58 = vadd.f32 %v3152_v48, %v271_v54  ;;  %v3877_v48 = vpack.c.bf16 %v3178_v47, %v3177_v45  ;;  %v3180_v53 = vld [vmem:[%s4887_s3 + $0x78] sm:$0xff] }
 0x21d   :  { %v3859_v60 = vpack.c.bf16 %v277_v52, %v272_v58  ;;  %3529 = vmatprep.mubr.msk.f32.mxu1 %vm368_vm1, %v184_v57  ;;  %v3179_v52 = vld [vmem:[%s4887_s3 + $0x70] sm:$0xff] }
 0x21e   :  { %v3881_v57 = vpack.c.bf16 %v3180_v53, %v3179_v52 }
 0x21f   :  { %3861 = vmatprep.subr.msk.bf16.mxu1 %vm4325_vm2, %v3859_v60 }
 0x220   :  { %3864 = vmatpush3.bf16.xpose.msk.msra.mxu1 %vm4325_vm2, %v3859_v60 }
 0x221   :  { %v3524_v63 = vpop.f32.mrb[2].mxu0  ;;  %3870 = vmatprep.subr.bf16.mxu1 %v3869_v61 }
 0x222   :  { %v365_v0 = vadd.f32 %v3524_v63, %v3160_v62  ;;  %v359_v1 = vpop.f32.mrb[3].mxu0 }
 0x223   :  { %v360_v4 = vadd.f32 %v3160_v62, %v359_v1  ;;  %v3182_v62 = vld [vmem:[%s4889_s4 + $0x3] ss:$0 sm:$0xff] }
 0x225   :  { %v3865_v6 = vpack.c.bf16 %v365_v0, %v360_v4 }
 0x227   :  { %3866 = vmatprep.subr.bf16.mxu0 %v3865_v6  ;;  %3530 = vmatmul.mubr.msk.f32.vlgmr.msra.gmra.mrb[2].mxu1 %vm368_vm1, %v189_v5 }
 0x228   :  { %3868 = vmatpush3.bf16.msra.mxu0 %v3865_v6  ;;  %3872 = vmatpush3.bf16.msra.mxu1 %v3869_v61 }
 0x229   :  { %3547 = vmatprep.mubr.msk.f32.mxu1 %vm59_vm0, %v4289_v41  ;;  %3874 = vmatprep.subr.bf16.mxu1 %v3873_v7 }
 0x22a   :  { %3878 = vmatprep.subr.bf16.mxu0 %v3877_v48 }
 0x22c   :  { %3876 = vmatpush3.bf16.msra.mxu1 %v3873_v7 }
 0x22d   :  { %3886 = vmatprep.subr.bf16.mxu1 %v3885_v10 }
 0x22f   :  { %3548 = vmatmul.mubr.msk.f32.vlgmr.msra.gmra.mrb[4].mxu1 %vm59_vm0, %v4301_v46 }
 0x230   :  { %3888 = vmatpush3.bf16.msra.mxu1 %v3885_v10  ;;  %3569 = vmatprep.mubr.msk.f32.mxu1 %vm59_vm0, %v4289_v41 }
 0x231   :  { %3890 = vmatprep.subr.bf16.mxu1 %v3889_v13 }
 0x234   :  { %3892 = vmatpush3.bf16.msra.mxu1 %v3889_v13 }
 0x237   :  { %3570 = vmatmul.mubr.msk.f32.vlgmr.msra.gmra.mrb[6].mxu1 %vm59_vm0, %v4301_v46 }
 0x2fa   :  { %v3531_v14 = vpop.f32.mrb[2].mxu1 }
 0x2fb   :  { %v457_v16 = vmul.f32 0.25, %v3531_v14  ;;  %v447_v17 = vpop.f32.mrb[3].mxu1 }
 0x2fc   :  { %v456_v19 = vmul.f32 0.25, %v447_v17 }
 0x2fd   :  { %v459_v20 = vadd.f32 %v457_v16, %v4367_v15 }
 0x2fe   :  { %v458_v21 = vadd.f32 %v456_v19, %v4372_v18 }
 0x2ff   :  { %v463_v22 = vsel %vm368_vm1, %v459_v20, -inf }
 0x300   :  { %464 = vmax.xlane.f32.xlu1 %v463_v22  ;;  %v460_v23 = vsel %vm368_vm1, %v458_v21, -inf }
 0x301   :  { %461 = vmax.xlane.f32.xlu0 %v460_v23 }
 0x302   :  { %v3549_v25 = vpop.f32.mrb[4].mxu1 }
 0x303   :  { %v650_v26 = vadd.f32 %v3549_v25, %v3174_v24  ;;  %v644_v27 = vpop.f32.mrb[5].mxu1  ;;  %v3200_v25 = vld [vmem:[%s4891_s5 + $0x18] sm:$0xff] }
 0x304   :  { %v645_v58 = vadd.f32 %v3174_v24, %v644_v27  ;;  %v3199_v24 = vld [vmem:[%s4891_s5 + $0x10] sm:$0xff] }
 0x30a   :  { %v3571_v29 = vpop.f32.mrb[6].mxu1 }
 0x30b   :  { %v826_v30 = vadd.f32 %v3571_v29, %v3190_v28  ;;  %v820_v31 = vpop.f32.mrb[7].mxu1 }
 0x30c   :  { %v821_v32 = vadd.f32 %v3190_v28, %v820_v31 }
 0x30e   :  { %v3899_v33 = vpack.c.bf16 %v826_v30, %v821_v32 }
 0x310   :  { %3900 = vmatprep.subr.bf16.mxu1 %v3899_v33 }
 0x311   :  { %3902 = vmatpush3.bf16.msra.mxu1 %v3899_v33  ;;  %v563_v33 = vld [vmem:[%s4891_s5] sm:$0xff] }
 0x38d   :  { %v465_v34 = vpop.xlane.xlu1 %464 }
 0x38e   :  { %v467_v35 = vsub.f32 %v459_v20, %v465_v34  ;;  %v462_v36 = vpop.xlane.xlu0 %461  ;;  %v564_v34 = vld [vmem:[%s4891_s5 + $0x8] sm:$0xff] }
 0x38f   :  { %v466_v37 = vsub.f32 %v458_v21, %v462_v36 }
 0x390   :  { %v470_v38 = vmul.f32 1.442695, %v467_v35  ;;  %v3907_v35 = vpack.c.bf16 %v564_v34, %v563_v33  ;;  %v1350_v33 = vld [vmem:[%s4894_s9 + $0x30] sm:$0xff]  ;;  %v1351_v34 = vld [vmem:[%s4894_s9 + $0x38] sm:$0xff] }
 0x391   :  { %v468_v39 = vmul.f32 1.442695, %v466_v37 }
 0x392   :  { %4098 = vpow2.f32 %v470_v38  ;;  %v1190_v38 = vlaneseq }
 0x393   :  { %4100 = vpow2.f32 %v468_v39 }
 0x394   :  { %v4437_v39 = vshrl.u32 %v1190_v38, 7  ;;  %v1354_v38 = vld [vmem:[%s4894_s9 + $0x50] sm:$0xff] }
 0x39c   :  { %v4099_v40 = vpop.eup %4098 }
 0x39d   :  { %v4101_v42 = vpop.eup %4100  ;;  %v475_v43 = vsel %vm368_vm1, %v4099_v40, 0.0 }
 0x39e   :  { %476 = vadd.xlane.f32.xlu1 %v475_v43  ;;  %v472_v44 = vsel %vm368_vm1, %v4101_v42, 0.0 }
 0x39f   :  { %473 = vadd.xlane.f32.xlu0 %v472_v44 }
 0x42b   :  { %v477_v49 = vpop.xlane.xlu1 %476 }
 0x42c   :  { %4102 = vrcp.f32 %v477_v49  ;;  %v474_v50 = vpop.xlane.xlu0 %473 }
 0x42d   :  { %4104 = vrcp.f32 %v474_v50 }
 0x436   :  { %v4103_v51 = vpop.eup %4102 }
 0x437   :  { %v4105_v54 = vpop.eup %4104  ;;  %v481_v56 = vmul.f32 %v4103_v51, %v4099_v40  ;;  %v1192_v40 = vsub.s32 0, %v4437_v39 }
 0x438   :  { %v480_v55 = vmul.f32 %v4105_v54, %v4101_v42  ;;  %v4443_v42 = vld [vmem:[%s4892_s6] sm:$0xff] }
 0x439   :  { %v1193_v43 = vrot.slane %v4443_v42, %v1192_v40 }
 0x43a   :  { %3536 = vmatprep.mubr.msk.f32.mxu0 %vm368_vm1, %v480_v55 }
 0x43b   :  { %3537 = vmatmul.mubr.msk.f32.vlgmr.msra.gmra.mrb[4].mxu0 %vm368_vm1, %v481_v56 }
 0x43c   :  { %3880 = vmatpush3.bf16.msra.mxu0 %v3877_v48  ;;  %3558 = vmatprep.mubr.msk.f32.mxu0 %vm59_vm0, %v4289_v41 }
 0x43d   :  { %3882 = vmatprep.subr.bf16.mxu0 %v3881_v57 }
 0x440   :  { %3884 = vmatpush3.bf16.msra.mxu0 %v3881_v57 }
 0x443   :  { %3559 = vmatmul.mubr.msk.f32.vlgmr.msra.gmra.mrb[6].mxu0 %vm59_vm0, %v4301_v46 }
 0x444   :  { %3576 = vmatprep.mubr.msk.f32.mxu0 %vm368_vm1, %v645_v58 }
 0x50e   :  { %v3538_v60 = vpop.f32.mrb[4].mxu0 }
 0x50f   :  { %v554_v61 = vpop.f32.mrb[5].mxu0 }
 0x516   :  { %v3560_v63 = vpop.f32.mrb[6].mxu0 }
 0x517   :  { %v738_v0 = vadd.f32 %v3560_v63, %v3182_v62  ;;  %v732_v1 = vpop.f32.mrb[7].mxu0  ;;  %v1235_v63 = vld [vmem:[%s4893_s7 + $0x8] sm:$0xff] }
 0x518   :  { %v733_v2 = vadd.f32 %v3182_v62, %v732_v1  ;;  %v1234_v62 = vld [vmem:[%s4893_s7] sm:$0xff]  ;;  %v1236_v1 = vld [vmem:[%s4893_s7 + $0x10] sm:$0xff] }
 0x51a   :  { %v3893_v3 = vpack.c.bf16 %v738_v0, %v733_v2  ;;  %v3911_v0 = vpack.c.bf16 %v1235_v63, %v1234_v62  ;;  %v1237_v2 = vld [vmem:[%s4893_s7 + $0x18] sm:$0xff] }
 0x51c   :  { %3895 = vmatprep.subr.msk.bf16.mxu0 %vm4325_vm2, %v3893_v3  ;;  %3912 = vmatprep.subr.bf16.mxu1 %v3911_v0 }
 0x51d   :  { %3898 = vmatpush3.bf16.xpose.msk.msra.mxu0 %vm4325_vm2, %v3893_v3  ;;  %v3915_v3 = vpack.c.bf16 %v1237_v2, %v1236_v1 }
 0x524   :  { %3577 = vmatmul.mubr.msk.f32.vlgmr.msra.gmra.mrb[8].mxu0 %vm368_vm1, %v650_v26  ;;  %v3903_v26 = vpack.c.bf16 %v3200_v25, %v3199_v24  ;;  %v1344_v24 = vld [vmem:[%s4894_s9] sm:$0xff]  ;;  %v1345_v25 = vld [vmem:[%s4894_s9 + $0x8] sm:$0xff] }
 0x526   :  { %3904 = vmatprep.subr.bf16.mxu0 %v3903_v26 }
 0x527   :  { %3906 = vmatpush3.bf16.msra.mxu0 %v3903_v26  ;;  %v3919_v26 = vpack.c.bf16 %v1345_v25, %v1344_v24 }
 0x528   :  { %3908 = vmatprep.subr.bf16.mxu0 %v3907_v35 }
 0x5f7   :  { %v3578_v4 = vpop.f32.mrb[8].mxu0 }
 0x5f8   :  { %v917_v5 = vmul.f32 0.25, %v3578_v4  ;;  %v907_v6 = vpop.f32.mrb[9].mxu0 }
 0x5f9   :  { %v916_v7 = vmul.f32 0.25, %v907_v6 }
 0x5fa   :  { %v919_v8 = vadd.f32 %v917_v5, %v4367_v15 }
 0x5fb   :  { %v918_v9 = vadd.f32 %v916_v7, %v4372_v18 }
 0x5fc   :  { %v923_v10 = vsel %vm368_vm1, %v919_v8, -inf }
 0x5fd   :  { %924 = vmax.xlane.f32.xlu1 %v923_v10  ;;  %v920_v11 = vsel %vm368_vm1, %v918_v9, -inf  ;;  %v1224_v10 = vsub.s32 1, %v4437_v39 }
 0x5fe   :  { %921 = vmax.xlane.f32.xlu0 %v920_v11  ;;  %v1230_v11 = vsub.s32 2, %v4437_v39 }
 0x68a   :  { %v925_v12 = vpop.xlane.xlu1 %924 }
 0x68b   :  { %v927_v13 = vsub.f32 %v919_v8, %v925_v12  ;;  %v922_v14 = vpop.xlane.xlu0 %921  ;;  %v1225_v12 = vrot.slane %v4443_v42, %v1224_v10 }
 0x68c   :  { %v926_v16 = vsub.f32 %v918_v9, %v922_v14 }
 0x68d   :  { %v930_v17 = vmul.f32 1.442695, %v927_v13 }
 0x68e   :  { %v928_v19 = vmul.f32 1.442695, %v926_v16 }
 0x68f   :  { %4106 = vpow2.f32 %v930_v17 }
 0x690   :  { %4108 = vpow2.f32 %v928_v19  ;;  %v1231_v19 = vrot.slane %v4443_v42, %v1230_v11 }
 0x699   :  { %v4107_v20 = vpop.eup %4106 }
 0x69a   :  { %v4109_v21 = vpop.eup %4108  ;;  %v935_v22 = vsel %vm368_vm1, %v4107_v20, 0.0 }
 0x69b   :  { %936 = vadd.xlane.f32.xlu1 %v935_v22  ;;  %v932_v23 = vsel %vm368_vm1, %v4109_v21, 0.0 }
 0x69c   :  { %933 = vadd.xlane.f32.xlu0 %v932_v23 }
 0x728   :  { %v937_v27 = vpop.xlane.xlu1 %936 }
 0x729   :  { %4110 = vrcp.f32 %v937_v27  ;;  %v934_v28 = vpop.xlane.xlu0 %933  ;;  %v1346_v27 = vld [vmem:[%s4894_s9 + $0x10] sm:$0xff] }
 0x72a   :  { %4112 = vrcp.f32 %v934_v28  ;;  %v1347_v28 = vld [vmem:[%s4894_s9 + $0x18] sm:$0xff] }
 0x733   :  { %v4111_v29 = vpop.eup %4110 }
 0x734   :  { %v4113_v30 = vpop.eup %4112  ;;  %v941_v32 = vmul.f32 %v4111_v29, %v4107_v20  ;;  %v3923_v29 = vpack.c.bf16 %v1347_v28, %v1346_v27 }
 0x735   :  { %v940_v31 = vmul.f32 %v4113_v30, %v4109_v21  ;;  %v1348_v30 = vld [vmem:[%s4894_s9 + $0x20] sm:$0xff] }
 0x737   :  { %3583 = vmatprep.mubr.msk.f32.mxu1 %vm368_vm1, %v940_v31  ;;  %v1349_v31 = vld [vmem:[%s4894_s9 + $0x28] sm:$0xff] }
 0x738   :  { %3584 = vmatmul.mubr.msk.f32.vlgmr.msra.gmra.mrb[8].mxu1 %vm368_vm1, %v941_v32  ;;  %v3927_v32 = vpack.c.bf16 %v1349_v31, %v1348_v30 }
 0x739   :  { %3914 = vmatpush3.bf16.msra.mxu1 %v3911_v0 }
 0x73a   :  { %3916 = vmatprep.subr.bf16.mxu1 %v3915_v3 }
 0x73d   :  { %3918 = vmatpush3.bf16.msra.mxu1 %v3915_v3 }
 0x80b   :  { %v3585_v36 = vpop.f32.mrb[8].mxu1 }
 0x80c   :  { %v1014_v37 = vpop.f32.mrb[9].mxu1 }
 0x80d   :  { %3590 = vmatprep.mubr.msk.f32.mxu0 %vm368_vm1, %v1014_v37  ;;  %v1353_v37 = vld [vmem:[%s4894_s9 + $0x48] sm:$0xff] }
 0x80e   :  { %3591 = vmatmul.mubr.msk.f32.vlgmr.msra.gmra.mrb[10].mxu0 %vm368_vm1, %v3585_v36  ;;  %v1352_v36 = vld [vmem:[%s4894_s9 + $0x40] sm:$0xff] }
 0x80f   :  { %3910 = vmatpush3.bf16.msra.mxu0 %v3907_v35  ;;  %3597 = vmatprep.mubr.msk.f32.mxu0 %vm368_vm1, %v554_v61  ;;  %v3931_v35 = vpack.c.bf16 %v1351_v34, %v1350_v33 }
 0x810   :  { %3920 = vmatprep.subr.bf16.mxu0 %v3919_v26 }
 0x816   :  { %3598 = vmatmul.mubr.msk.f32.vlgmr.msra.gmra.mrb[10].mxu0 %vm368_vm1, %v3538_v60 }
 0x817   :  { %3922 = vmatpush3.bf16.msra.mxu0 %v3919_v26 }
 0x818   :  { %3924 = vmatprep.subr.bf16.mxu0 %v3923_v29 }
 0x81b   :  { %3926 = vmatpush3.bf16.msra.mxu0 %v3923_v29 }
 0x81c   :  { %3928 = vmatprep.subr.bf16.mxu0 %v3927_v32 }
 0x81f   :  { %3930 = vmatpush3.bf16.msra.mxu0 %v3927_v32 }
 0x820   :  { %3932 = vmatprep.subr.bf16.mxu0 %v3931_v35 }
 0x823   :  { %3934 = vmatpush3.bf16.msra.mxu0 %v3931_v35 }
 0x8e9   :  { %v3599_v44 = vpop.f32.mrb[10].mxu0 }
 0x8ea   :  { %v1189_v45 = vadd.f32 %v3599_v44, %v4301_v46  ;;  %v1179_v47 = vpop.f32.mrb[11].mxu0  ;;  %v1355_v44 = vld [vmem:[%s4894_s9 + $0x58] sm:$0xff] }
 0x8eb   :  { %v1188_v48 = vadd.f32 %v1179_v47, %v4289_v41  ;;  %v1356_v47 = vld [vmem:[%s4894_s9 + $0x60] sm:$0xff] }
 0x8ec   :  { %v1195_v49 = vadd.f32 %v1193_v43, %v1189_v45  ;;  %v3939_v45 = vpack.c.bf16 %v1355_v44, %v1354_v38  ;;  %v3211_v38 = vld [vmem:[%s4887_s3 + $0xd0] sm:$0xff] }
 0x8ed   :  { %v1194_v50 = vadd.f32 %v1193_v43, %v1188_v48  ;;  %v3935_v43 = vpack.c.bf16 %v1353_v37, %v1352_v36  ;;  %v1357_v48 = vld [vmem:[%s4894_s9 + $0x68] sm:$0xff] }
 0x8ee   :  { %v1199_v51 = vsel %vm59_vm0, %v1195_v49, 0.0  ;;  %v3210_v36 = vld [vmem:[%s4887_s3 + $0xc8] sm:$0xff] }
 0x8ef   :  { %1200 = vadd.xlane.f32.xlu1 %v1199_v51  ;;  %v1196_v52 = vsel %vm59_vm0, %v1194_v50, 0.0  ;;  %3936 = vmatprep.subr.bf16.mxu0 %v3935_v43  ;;  %v1359_v51 = vld [vmem:[%s4894_s9 + $0x78] sm:$0xff] }
 0x8f0   :  { %1197 = vadd.xlane.f32.xlu0 %v1196_v52  ;;  %3938 = vmatpush3.bf16.msra.mxu0 %v3935_v43  ;;  %v3212_v43 = vld [vmem:[%s4887_s3 + $0xd8] sm:$0xff] }
 0x8f1   :  { %3940 = vmatprep.subr.bf16.mxu0 %v3939_v45  ;;  %v3955_v44 = vpack.c.bf16 %v3212_v43, %v3211_v38  ;;  %v3257_v38 = vld [vmem:[%s4887_s3 + $0x160] sm:$0xff]  ;;  %v3258_v43 = vld [vmem:[%s4887_s3 + $0x168] sm:$0xff] }
 0x8f4   :  { %3942 = vmatpush3.bf16.msra.mxu0 %v3939_v45  ;;  %v3217_v45 = vld [vmem:[%s4887_s3 + $0x100] sm:$0xff] }
 0x97c   :  { %v1201_v53 = vpop.xlane.xlu1 %1200 }
 0x97d   :  { %v1203_v54 = vmul.f32 0.03125, %v1201_v53  ;;  %v1198_v55 = vpop.xlane.xlu0 %1197  ;;  %v3205_v53 = vld [vmem:[%s4895_s8] ss:$0 sm:$0xff] }
 0x97e   :  { %v1202_v56 = vmul.f32 0.03125, %v1198_v55 }
 0x97f   :  { %v1205_v57 = vsub.f32 %v1195_v49, %v1203_v54  ;;  %v3943_v49 = vpack.c.bf16 %v1357_v48, %v1356_v47  ;;  %v3218_v47 = vld [vmem:[%s4887_s3 + $0x108] sm:$0xff] }
 0x980   :  { %v1204_v58 = vsub.f32 %v1194_v50, %v1202_v56  ;;  %v1358_v50 = vld [vmem:[%s4894_s9 + $0x70] sm:$0xff]  ;;  %v3959_v48 = vpack.c.bf16 %v3218_v47, %v3217_v45  ;;  %v3260_v47 = vld [vmem:[%s4887_s3 + $0x178] sm:$0xff] }
 0x981   :  { %v1207_v60 = vmul.f32 %v1205_v57, %v1205_v57  ;;  %3944 = vmatprep.subr.bf16.mxu0 %v3943_v49  ;;  %v3947_v52 = vpack.c.bf16 %v1359_v51, %v1358_v50  ;;  %v3259_v45 = vld [vmem:[%s4887_s3 + $0x170] sm:$0xff] }
 0x982   :  { %v1206_v61 = vmul.f32 %v1204_v58, %v1204_v58  ;;  %3946 = vmatpush3.bf16.msra.mxu0 %v3943_v49 }
 0x983   :  { %v1211_v46 = vsel %vm59_vm0, %v1207_v60, 0.0  ;;  %3948 = vmatprep.subr.bf16.mxu0 %v3947_v52 }
 0x984   :  { %1212 = vadd.xlane.f32.xlu1 %v1211_v46  ;;  %v1208_v41 = vsel %vm59_vm0, %v1206_v61, 0.0 }
 0x985   :  { %1209 = vadd.xlane.f32.xlu0 %v1208_v41 }
 0x986   :  { %3950 = vmatpush3.bf16.msra.mxu0 %v3947_v52 }
 0xa11   :  { %v1213_v4 = vpop.xlane.xlu1 %1212 }
 0xa12   :  { %v1215_v5 = vmul.f32 0.03125, %v1213_v4  ;;  %v1210_v6 = vpop.xlane.xlu0 %1209 }
 0xa13   :  { %v1214_v7 = vmul.f32 0.03125, %v1210_v6 }
 0xa14   :  { %v1217_v8 = vadd.f32 1e-05, %v1215_v5 }
 0xa15   :  { %v1216_v9 = vadd.f32 1e-05, %v1214_v7 }
 0xa16   :  { %4114 = vrsqrt.f32 %v1217_v8 }
 0xa17   :  { %4116 = vrsqrt.f32 %v1216_v9 }
 0xa20   :  { %v4115_v13 = vpop.eup %4114 }
 0xa21   :  { %v4117_v14 = vpop.eup %4116  ;;  %v1221_v16 = vmul.f32 %v4115_v13, %v1205_v57  ;;  %v1362_v13 = vsub.s32 3, %v4437_v39 }
 0xa22   :  { %v1220_v17 = vmul.f32 %v4117_v14, %v1204_v58 }
 0xa23   :  { %v1227_v20 = vmul.f32 %v1225_v12, %v1221_v16  ;;  %v1363_v14 = vrot.slane %v4443_v42, %v1362_v13 }
 0xa24   :  { %v1226_v21 = vmul.f32 %v1225_v12, %v1220_v17 }
 0xa25   :  { %v4476_v23 = vadd.f32 %v1231_v19, %v1227_v20 }
 0xa26   :  { %v4474_v22 = vadd.f32 %v1231_v19, %v1226_v21 }
 0xa28   :  { %3608 = vmatprep.mubr.msk.f32.mxu1 %vm59_vm0, %v4474_v22 }
 0xa29   :  { %3609 = vmatmul.mubr.msk.f32.vlgmr.msra.gmra.mrb[10].mxu1 %vm59_vm0, %v4476_v23 }
 0xafc   :  { %v3610_v54 = vpop.f32.mrb[10].mxu1 }
 0xafd   :  { %v1323_v55 = vadd.f32 %v3610_v54, %v3205_v53  ;;  %v1317_v56 = vpop.f32.mrb[11].mxu1 }
 0xafe   :  { %v1318_v57 = vadd.f32 %v3205_v53, %v1317_v56  ;;  %v1475_v56 = vsub.s32 5, %v4437_v39 }
 0xaff   :  { %v1327_v58 = vmul.f32 %v1323_v55, %v1323_v55 }
 0xb00   :  { %v1326_v60 = vmul.f32 %v1318_v57, %v1318_v57 }
 0xb01   :  { %v1329_v61 = vmul.f32 %v1327_v58, %v1323_v55 }
 0xb02   :  { %v1328_v46 = vmul.f32 %v1326_v60, %v1318_v57 }
 0xb03   :  { %v1331_v41 = vmul.f32 0.044715, %v1329_v61 }
 0xb04   :  { %v1330_v62 = vmul.f32 0.044715, %v1328_v46  ;;  %v1476_v46 = vrot.slane %v4443_v42, %v1475_v56 }
 0xb05   :  { %v1333_v63 = vadd.f32 %v1331_v41, %v1323_v55 }
 0xb06   :  { %v1332_v0 = vadd.f32 %v1330_v62, %v1318_v57 }
 0xb07   :  { %v1335_v1 = vmul.f32 0.7978846, %v1333_v63 }
 0xb08   :  { %v1334_v2 = vmul.f32 0.7978846, %v1332_v0  ;;  %v3219_v0 = vld [vmem:[%s4887_s3 + $0x110] sm:$0xff] }
 0xb09   :  { %4118 = vtanh.f32 %v1335_v1  ;;  %v3220_v1 = vld [vmem:[%s4887_s3 + $0x118] sm:$0xff] }
 0xb0a   :  { %4120 = vtanh.f32 %v1334_v2 }
 0xb13   :  { %v4119_v3 = vpop.eup %4118 }
 0xb14   :  { %v4121_v4 = vpop.eup %4120  ;;  %v1339_v5 = vadd.f32 1.0, %v4119_v3 }
 0xb15   :  { %v1338_v6 = vadd.f32 1.0, %v4121_v4  ;;  %v3963_v4 = vpack.c.bf16 %v3220_v1, %v3219_v0 }
 0xb16   :  { %v1341_v7 = vmul.f32 0.5, %v1339_v5  ;;  %v3226_v5 = vld [vmem:[%s4887_s3 + $0x148] sm:$0xff] }
 0xb17   :  { %v1340_v8 = vmul.f32 0.5, %v1338_v6 }
 0xb18   :  { %v1343_v12 = vmul.f32 %v1341_v7, %v1323_v55  ;;  %v1469_v55 = vsub.s32 4, %v4437_v39  ;;  %v3227_v7 = vld [vmem:[%s4887_s3 + $0x150] sm:$0xff]  ;;  %v3049_v39 = vld [vmem:[%s4898_s12 + $0x8] sm:$0xff] }
 0xb19   :  { %v1342_v9 = vmul.f32 %v1340_v8, %v1318_v57  ;;  %v3228_v8 = vld [vmem:[%s4887_s3 + $0x158] sm:$0xff] }
 0xb1a   :  { %v1470_v57 = vrot.slane %v4443_v42, %v1469_v55  ;;  %v3225_v42 = vld [vmem:[%s4887_s3 + $0x140] sm:$0xff] }
 0xb1b   :  { %3643 = vmatprep.mubr.f32.mxu0 %v1342_v9  ;;  %v3967_v6 = vpack.c.bf16 %v3226_v5, %v3225_v42  ;;  %v3971_v9 = vpack.c.bf16 %v3228_v8, %v3227_v7 }
 0xb1c   :  { %3644 = vmatmul.mubr.f32.vlgmr.msra.gmra.mrb[12].mxu0 %v1343_v12  ;;  %v3214_v12 = vld [vmem:[%s4889_s4 + $0x6] ss:$0 sm:$0xff] }
 0xbef   :  { %v3645_v16 = vpop.f32.mrb[12].mxu0 }
 0xbf0   :  { %v1436_v17 = vadd.f32 %v3645_v16, %v1363_v14  ;;  %v1430_v19 = vpop.f32.mrb[13].mxu0 }
 0xbf1   :  { %v1431_v20 = vadd.f32 %v1430_v19, %v1363_v14  ;;  %v3222_v19 = vld [vmem:[%s4889_s4 + $0x8] ss:$0 sm:$0xff] }
 0xbf2   :  { %v1440_v21 = vadd.f32 %v1436_v17, %v4476_v23 }
 0xbf3   :  { %v1439_v24 = vadd.f32 %v1431_v20, %v4474_v22  ;;  %v3209_v22 = vld [vmem:[%s4887_s3 + $0xc0] sm:$0xff] }
 0xbf4   :  { %v1444_v25 = vsel %vm59_vm0, %v1440_v21, 0.0  ;;  %v3951_v37 = vpack.c.bf16 %v3210_v36, %v3209_v22 }
 0xbf5   :  { %1445 = vadd.xlane.f32.xlu1 %v1444_v25  ;;  %v1441_v26 = vsel %vm59_vm0, %v1439_v24, 0.0  ;;  %v3241_v25 = vld [vmem:[%s4887_s3 + $0xe0] sm:$0xff] }
 0xbf6   :  { %1442 = vadd.xlane.f32.xlu0 %v1441_v26  ;;  %3952 = vmatprep.subr.bf16.mxu1 %v3951_v37  ;;  %v3242_v26 = vld [vmem:[%s4887_s3 + $0xe8] sm:$0xff] }
 0xbf7   :  { %3954 = vmatpush3.bf16.msra.mxu1 %v3951_v37 }
 0xbf8   :  { %3956 = vmatprep.subr.bf16.mxu1 %v3955_v44 }
 0xbfb   :  { %3958 = vmatpush3.bf16.msra.mxu1 %v3955_v44  ;;  %v4001_v44 = vpack.c.bf16 %v3258_v43, %v3257_v38 }
 0xbfc   :  { %3960 = vmatprep.subr.bf16.mxu1 %v3959_v48 }
 0xc82   :  { %v1446_v27 = vpop.xlane.xlu1 %1445 }
 0xc83   :  { %v1448_v28 = vmul.f32 0.03125, %v1446_v27  ;;  %v1443_v29 = vpop.xlane.xlu0 %1442 }
 0xc84   :  { %v1447_v30 = vmul.f32 0.03125, %v1443_v29  ;;  %v3985_v29 = vpack.c.bf16 %v3242_v26, %v3241_v25 }
 0xc85   :  { %v1450_v31 = vsub.f32 %v1440_v21, %v1448_v28 }
 0xc86   :  { %v1449_v32 = vsub.f32 %v1439_v24, %v1447_v30  ;;  %v3230_v30 = vld [vmem:[%s4889_s4 + $0xa] ss:$0 sm:$0xff] }
 0xc87   :  { %v1452_v33 = vmul.f32 %v1450_v31, %v1450_v31 }
 0xc88   :  { %v1451_v34 = vmul.f32 %v1449_v32, %v1449_v32 }
 0xc89   :  { %v1456_v35 = vsel %vm59_vm0, %v1452_v33, 0.0 }
 0xc8a   :  { %1457 = vadd.xlane.f32.xlu1 %v1456_v35  ;;  %v1453_v23 = vsel %vm59_vm0, %v1451_v34, 0.0  ;;  %v3243_v34 = vld [vmem:[%s4887_s3 + $0xf0] sm:$0xff]  ;;  %v3244_v35 = vld [vmem:[%s4887_s3 + $0xf8] sm:$0xff] }
 0xc8b   :  { %1454 = vadd.xlane.f32.xlu0 %v1453_v23  ;;  %v3989_v37 = vpack.c.bf16 %v3244_v35, %v3243_v34 }
 0xd17   :  { %v1458_v49 = vpop.xlane.xlu1 %1457 }
 0xd18   :  { %v1460_v50 = vmul.f32 0.03125, %v1458_v49  ;;  %v1455_v51 = vpop.xlane.xlu0 %1454 }
 0xd19   :  { %v1459_v52 = vmul.f32 0.03125, %v1455_v51 }
 0xd1a   :  { %v1462_v53 = vadd.f32 1e-05, %v1460_v50 }
 0xd1b   :  { %v1461_v54 = vadd.f32 1e-05, %v1459_v52 }
 0xd1c   :  { %4122 = vrsqrt.f32 %v1462_v53 }
 0xd1d   :  { %4124 = vrsqrt.f32 %v1461_v54 }
 0xd26   :  { %v4123_v58 = vpop.eup %4122 }
 0xd27   :  { %v4125_v60 = vpop.eup %4124  ;;  %v1466_v61 = vmul.f32 %v4123_v58, %v1450_v31 }
 0xd28   :  { %v1465_v41 = vmul.f32 %v4125_v60, %v1449_v32  ;;  %v3246_v60 = vld [vmem:[%s4889_s4 + $0x7] ss:$0 sm:$0xff] }
 0xd29   :  { %v1472_v62 = vmul.f32 %v1470_v57, %v1466_v61 }
 0xd2a   :  { %v1471_v63 = vmul.f32 %v1470_v57, %v1465_v41 }
 0xd2b   :  { %v4577_v3 = vadd.f32 %v1476_v46, %v1472_v62  ;;  %v3262_v62 = vld [vmem:[%s4889_s4 + $0xb] ss:$0 sm:$0xff] }
 0xd2c   :  { %v4575_v2 = vadd.f32 %v1476_v46, %v1471_v63 }
 0xd2e   :  { %3654 = vmatprep.mubr.msk.f32.mxu1 %vm59_vm0, %v4575_v2 }
 0xd2f   :  { %3655 = vmatmul.mubr.msk.f32.vlgmr.msra.gmra.mrb[12].mxu1 %vm59_vm0, %v4577_v3 }
 0xd30   :  { %3962 = vmatpush3.bf16.msra.mxu1 %v3959_v48  ;;  %3665 = vmatprep.mubr.msk.f32.mxu1 %vm59_vm0, %v4575_v2  ;;  %v4005_v48 = vpack.c.bf16 %v3260_v47, %v3259_v45 }
 0xd31   :  { %3964 = vmatprep.subr.bf16.mxu1 %v3963_v4 }
 0xd34   :  { %3966 = vmatpush3.bf16.msra.mxu1 %v3963_v4 }
 0xd35   :  { %3968 = vmatprep.subr.bf16.mxu1 %v3967_v6 }
 0xd37   :  { %3666 = vmatmul.mubr.msk.f32.vlgmr.msra.gmra.mrb[14].mxu1 %vm59_vm0, %v4577_v3 }
 0xd38   :  { %3970 = vmatpush3.bf16.msra.mxu1 %v3967_v6  ;;  %3676 = vmatprep.mubr.msk.f32.mxu1 %vm59_vm0, %v4575_v2 }
 0xd39   :  { %3972 = vmatprep.subr.bf16.mxu1 %v3971_v9 }
 0xd3c   :  { %3974 = vmatpush3.bf16.msra.mxu1 %v3971_v9 }
 0xd3f   :  { %3677 = vmatmul.mubr.msk.f32.vlgmr.msra.gmra.mrb[16].mxu1 %vm59_vm0, %v4577_v3 }
 0xe02   :  { %v3656_v14 = vpop.f32.mrb[12].mxu1 }
 0xe03   :  { %v1566_v16 = vpop.f32.mrb[13].mxu1  ;;  %v1572_v22 = vadd.f32 %v3656_v14, %v3214_v12 }
 0xe04   :  { %v1567_v17 = vadd.f32 %v3214_v12, %v1566_v16 }
 0xe06   :  { %3683 = vmatprep.mubr.msk.f32.mxu1 %vm368_vm1, %v1567_v17 }
 0xe0a   :  { %v3667_v20 = vpop.f32.mrb[14].mxu1 }
 0xe0b   :  { %v1660_v21 = vadd.f32 %v3667_v20, %v3222_v19  ;;  %v1654_v24 = vpop.f32.mrb[15].mxu1  ;;  %v3249_v20 = vld [vmem:[%s4887_s3 + $0x120] sm:$0xff] }
 0xe0c   :  { %v1655_v27 = vadd.f32 %v3222_v19, %v1654_v24 }
 0xe0e   :  { %v3975_v28 = vpack.c.bf16 %v1660_v21, %v1655_v27  ;;  %v3250_v21 = vld [vmem:[%s4887_s3 + $0x128] sm:$0xff] }
 0xe0f   :  { %v3993_v24 = vpack.c.bf16 %v3250_v21, %v3249_v20 }
 0xe10   :  { %3977 = vmatprep.subr.msk.bf16.mxu1 %vm4325_vm2, %v3975_v28 }
 0xe11   :  { %3980 = vmatpush3.bf16.xpose.msk.msra.mxu1 %vm4325_vm2, %v3975_v28  ;;  %v3251_v28 = vld [vmem:[%s4887_s3 + $0x130] sm:$0xff] }
 0xe12   :  { %v3678_v31 = vpop.f32.mrb[16].mxu1  ;;  %3986 = vmatprep.subr.bf16.mxu1 %v3985_v29 }
 0xe13   :  { %v1748_v32 = vadd.f32 %v3678_v31, %v3230_v30  ;;  %v1742_v33 = vpop.f32.mrb[17].mxu1 }
 0xe14   :  { %v1743_v23 = vadd.f32 %v3230_v30, %v1742_v33 }
 0xe16   :  { %v3981_v36 = vpack.c.bf16 %v1748_v32, %v1743_v23 }
 0xe18   :  { %3684 = vmatmul.mubr.msk.f32.vlgmr.msra.gmra.mrb[18].mxu1 %vm368_vm1, %v1572_v22  ;;  %3982 = vmatprep.subr.bf16.mxu0 %v3981_v36  ;;  %v3254_v22 = vld [vmem:[%s4889_s4 + $0x9] ss:$0 sm:$0xff] }
 0xe19   :  { %3984 = vmatpush3.bf16.msra.mxu0 %v3981_v36  ;;  %3988 = vmatpush3.bf16.msra.mxu1 %v3985_v29  ;;  %v3252_v29 = vld [vmem:[%s4887_s3 + $0x138] sm:$0xff] }
 0xe1a   :  { %3701 = vmatprep.mubr.msk.f32.mxu1 %vm59_vm0, %v4575_v2  ;;  %3990 = vmatprep.subr.bf16.mxu1 %v3989_v37  ;;  %v3997_v33 = vpack.c.bf16 %v3252_v29, %v3251_v28 }
 0xe1b   :  { %3994 = vmatprep.subr.bf16.mxu0 %v3993_v24 }
 0xe1d   :  { %3992 = vmatpush3.bf16.msra.mxu1 %v3989_v37 }
 0xe1e   :  { %4002 = vmatprep.subr.bf16.mxu1 %v4001_v44 }
 0xe20   :  { %3702 = vmatmul.mubr.msk.f32.vlgmr.msra.gmra.mrb[20].mxu1 %vm59_vm0, %v4577_v3 }
 0xe21   :  { %4004 = vmatpush3.bf16.msra.mxu1 %v4001_v44  ;;  %3723 = vmatprep.mubr.msk.f32.mxu1 %vm59_vm0, %v4575_v2 }
 0xe22   :  { %4006 = vmatprep.subr.bf16.mxu1 %v4005_v48 }
 0xe25   :  { %4008 = vmatpush3.bf16.msra.mxu1 %v4005_v48 }
 0xe28   :  { %3724 = vmatmul.mubr.msk.f32.vlgmr.msra.gmra.mrb[22].mxu1 %vm59_vm0, %v4577_v3 }
 0xeeb   :  { %v3685_v49 = vpop.f32.mrb[18].mxu1 }
 0xeec   :  { %v1839_v50 = vmul.f32 0.25, %v3685_v49  ;;  %v1829_v51 = vpop.f32.mrb[19].mxu1 }
 0xeed   :  { %v1838_v52 = vmul.f32 0.25, %v1829_v51 }
 0xeee   :  { %v1841_v53 = vadd.f32 %v1839_v50, %v4367_v15 }
 0xeef   :  { %v1840_v54 = vadd.f32 %v1838_v52, %v4372_v18 }
 0xef0   :  { %v1845_v57 = vsel %vm368_vm1, %v1841_v53, -inf }
 0xef1   :  { %1846 = vmax.xlane.f32.xlu1 %v1845_v57  ;;  %v1842_v58 = vsel %vm368_vm1, %v1840_v54, -inf }
 0xef2   :  { %1843 = vmax.xlane.f32.xlu0 %v1842_v58 }
 0xef3   :  { %v3703_v61 = vpop.f32.mrb[20].mxu1 }
 0xef4   :  { %v2033_v46 = vadd.f32 %v3703_v61, %v3246_v60  ;;  %v2027_v41 = vpop.f32.mrb[21].mxu1 }
 0xef5   :  { %v2028_v34 = vadd.f32 %v3246_v60, %v2027_v41 }
 0xefb   :  { %v3725_v63 = vpop.f32.mrb[22].mxu1 }
 0xefc   :  { %v2209_v0 = vadd.f32 %v3725_v63, %v3262_v62  ;;  %v2203_v1 = vpop.f32.mrb[23].mxu1  ;;  %v3272_v63 = vld [vmem:[%s4891_s5 + $0x38] sm:$0xff] }
 0xefd   :  { %v2204_v4 = vadd.f32 %v3262_v62, %v2203_v1  ;;  %v3271_v62 = vld [vmem:[%s4891_s5 + $0x30] sm:$0xff] }
 0xeff   :  { %v4015_v42 = vpack.c.bf16 %v2209_v0, %v2204_v4  ;;  %v4019_v0 = vpack.c.bf16 %v3272_v63, %v3271_v62  ;;  %v3288_v62 = vld [vmem:[%s4894_s9 + $0x98] sm:$0xff] }
 0xf01   :  { %4016 = vmatprep.subr.bf16.mxu1 %v4015_v42 }
 0xf02   :  { %4018 = vmatpush3.bf16.msra.mxu1 %v4015_v42 }
 0xf7e   :  { %v1847_v5 = vpop.xlane.xlu1 %1846 }
 0xf7f   :  { %v1849_v6 = vsub.f32 %v1841_v53, %v1847_v5  ;;  %v1844_v7 = vpop.xlane.xlu0 %1843 }
 0xf80   :  { %v1848_v8 = vsub.f32 %v1840_v54, %v1844_v7 }
 0xf81   :  { %v1852_v9 = vmul.f32 1.442695, %v1849_v6 }
 0xf82   :  { %v1850_v12 = vmul.f32 1.442695, %v1848_v8  ;;  %v3239_v8 = vld [vmem:[%s4891_s5 + $0x20] sm:$0xff] }
 0xf83   :  { %4126 = vpow2.f32 %v1852_v9  ;;  %v3240_v9 = vld [vmem:[%s4891_s5 + $0x28] sm:$0xff] }
 0xf84   :  { %4128 = vpow2.f32 %v1850_v12  ;;  %v4023_v12 = vpack.c.bf16 %v3240_v9, %v3239_v8  ;;  %v3294_v8 = vld [vmem:[%s4894_s9 + $0xc8] sm:$0xff]  ;;  %v3295_v9 = vld [vmem:[%s4894_s9 + $0xd0] sm:$0xff] }
 0xf8d   :  { %v4127_v14 = vpop.eup %4126 }
 0xf8e   :  { %v4129_v16 = vpop.eup %4128  ;;  %v1857_v17 = vsel %vm368_vm1, %v4127_v14, 0.0 }
 0xf8f   :  { %1858 = vadd.xlane.f32.xlu1 %v1857_v17  ;;  %v1854_v19 = vsel %vm368_vm1, %v4129_v16, 0.0  ;;  %v4716_v17 = vld [vmem:[%s4892_s6 + $0x8] sm:$0xff] }
 0xf90   :  { %1855 = vadd.xlane.f32.xlu0 %v1854_v19  ;;  %v2576_v19 = vrot.slane %v4716_v17, %v1192_v40 }
0x101c   :  { %v1859_v25 = vpop.xlane.xlu1 %1858 }
0x101d   :  { %4130 = vrcp.f32 %v1859_v25  ;;  %v1856_v26 = vpop.xlane.xlu0 %1855 }
0x101e   :  { %4132 = vrcp.f32 %v1856_v26 }
0x1027   :  { %v4131_v27 = vpop.eup %4130 }
0x1028   :  { %v4133_v30 = vpop.eup %4132  ;;  %v1863_v32 = vmul.f32 %v4131_v27, %v4127_v14 }
0x1029   :  { %v1862_v31 = vmul.f32 %v4133_v30, %v4129_v16 }
0x102b   :  { %3690 = vmatprep.mubr.msk.f32.mxu0 %vm368_vm1, %v1862_v31 }
0x102c   :  { %3691 = vmatmul.mubr.msk.f32.vlgmr.msra.gmra.mrb[14].mxu0 %vm368_vm1, %v1863_v32 }
0x102d   :  { %3996 = vmatpush3.bf16.msra.mxu0 %v3993_v24  ;;  %3712 = vmatprep.mubr.msk.f32.mxu0 %vm59_vm0, %v4575_v2 }
0x102e   :  { %3998 = vmatprep.subr.bf16.mxu0 %v3997_v33 }
0x1031   :  { %4000 = vmatpush3.bf16.msra.mxu0 %v3997_v33 }
0x1034   :  { %3713 = vmatmul.mubr.msk.f32.vlgmr.msra.gmra.mrb[16].mxu0 %vm59_vm0, %v4577_v3 }
0x1035   :  { %3730 = vmatprep.mubr.msk.f32.mxu0 %vm368_vm1, %v2028_v34 }
0x10ff   :  { %v3692_v35 = vpop.f32.mrb[14].mxu0 }
0x1100   :  { %v1936_v23 = vpop.f32.mrb[15].mxu0 }
0x1107   :  { %v3714_v36 = vpop.f32.mrb[16].mxu0 }
0x1108   :  { %v2121_v37 = vadd.f32 %v3714_v36, %v3254_v22  ;;  %v2115_v38 = vpop.f32.mrb[17].mxu0  ;;  %v3278_v36 = vld [vmem:[%s4893_s7 + $0x28] sm:$0xff] }
0x1109   :  { %v2116_v43 = vadd.f32 %v3254_v22, %v2115_v38  ;;  %v3277_v22 = vld [vmem:[%s4893_s7 + $0x20] sm:$0xff]  ;;  %v3279_v38 = vld [vmem:[%s4893_s7 + $0x30] sm:$0xff] }
0x110b   :  { %v4009_v44 = vpack.c.bf16 %v2121_v37, %v2116_v43  ;;  %v4027_v37 = vpack.c.bf16 %v3278_v36, %v3277_v22  ;;  %v3280_v43 = vld [vmem:[%s4893_s7 + $0x38] sm:$0xff] }
0x110d   :  { %4011 = vmatprep.subr.msk.bf16.mxu0 %vm4325_vm2, %v4009_v44  ;;  %4028 = vmatprep.subr.bf16.mxu1 %v4027_v37 }
0x110e   :  { %4014 = vmatpush3.bf16.xpose.msk.msra.mxu0 %vm4325_vm2, %v4009_v44  ;;  %v4031_v44 = vpack.c.bf16 %v3280_v43, %v3279_v38 }
0x110f   :  { %4020 = vmatprep.subr.bf16.mxu0 %v4019_v0 }
0x1115   :  { %3731 = vmatmul.mubr.msk.f32.vlgmr.msra.gmra.mrb[18].mxu0 %vm368_vm1, %v2033_v46 }
0x1116   :  { %4022 = vmatpush3.bf16.msra.mxu0 %v4019_v0  ;;  %v3289_v0 = vld [vmem:[%s4894_s9 + $0xa0] sm:$0xff] }
0x1117   :  { %4024 = vmatprep.subr.bf16.mxu0 %v4023_v12 }
0x11e8   :  { %v3732_v45 = vpop.f32.mrb[18].mxu0 }
0x11e9   :  { %v2300_v47 = vmul.f32 0.25, %v3732_v45  ;;  %v2290_v48 = vpop.f32.mrb[19].mxu0 }
0x11ea   :  { %v2299_v49 = vmul.f32 0.25, %v2290_v48 }
0x11eb   :  { %v2302_v50 = vadd.f32 %v2300_v47, %v4367_v15 }
0x11ec   :  { %v2301_v51 = vadd.f32 %v2299_v49, %v4372_v18 }
0x11ed   :  { %v2306_v52 = vsel %vm368_vm1, %v2302_v50, -inf }
0x11ee   :  { %2307 = vmax.xlane.f32.xlu1 %v2306_v52  ;;  %v2303_v53 = vsel %vm368_vm1, %v2301_v51, -inf  ;;  %v2608_v52 = vrot.slane %v4716_v17, %v1224_v10  ;;  %v3285_v10 = vld [vmem:[%s4894_s9 + $0x80] sm:$0xff] }
0x11ef   :  { %2304 = vmax.xlane.f32.xlu0 %v2303_v53 }
0x127b   :  { %v2308_v54 = vpop.xlane.xlu1 %2307 }
0x127c   :  { %v2310_v57 = vsub.f32 %v2302_v50, %v2308_v54  ;;  %v2305_v59 = vpop.xlane.xlu0 %2304 }
0x127d   :  { %v2309_v58 = vsub.f32 %v2301_v51, %v2305_v59 }
0x127e   :  { %v2313_v60 = vmul.f32 1.442695, %v2310_v57 }
0x127f   :  { %v2311_v61 = vmul.f32 1.442695, %v2309_v58  ;;  %v2614_v58 = vrot.slane %v4716_v17, %v1230_v11  ;;  %v3286_v11 = vld [vmem:[%s4894_s9 + $0x88] sm:$0xff] }
0x1280   :  { %4134 = vpow2.f32 %v2313_v60 }
0x1281   :  { %4136 = vpow2.f32 %v2311_v61 }
0x128a   :  { %v4135_v46 = vpop.eup %4134 }
0x128b   :  { %v4137_v41 = vpop.eup %4136  ;;  %v2318_v15 = vsel %vm368_vm1, %v4135_v46, 0.0 }
0x128c   :  { %2319 = vadd.xlane.f32.xlu1 %v2318_v15  ;;  %v2315_v18 = vsel %vm368_vm1, %v4137_v41, 0.0  ;;  %v4035_v15 = vpack.c.bf16 %v3286_v11, %v3285_v10 }
0x128d   :  { %2316 = vadd.xlane.f32.xlu0 %v2315_v18  ;;  %v3287_v18 = vld [vmem:[%s4894_s9 + $0x90] sm:$0xff] }
0x128e   :  { %v4039_v63 = vpack.c.bf16 %v3288_v62, %v3287_v18 }
0x1319   :  { %v2320_v1 = vpop.xlane.xlu1 %2319 }
0x131a   :  { %4138 = vrcp.f32 %v2320_v1  ;;  %v2317_v4 = vpop.xlane.xlu0 %2316  ;;  %v3290_v1 = vld [vmem:[%s4894_s9 + $0xa8] sm:$0xff] }
0x131b   :  { %4140 = vrcp.f32 %v2317_v4  ;;  %v4043_v4 = vpack.c.bf16 %v3290_v1, %v3289_v0  ;;  %v2866_v1 = vld [vmem:[%s4896_s10 + $0x8] sm:$0xff] }
0x1324   :  { %v4139_v42 = vpop.eup %4138 }
0x1325   :  { %v4141_v5 = vpop.eup %4140  ;;  %v2324_v7 = vmul.f32 %v4139_v42, %v4135_v46  ;;  %v3291_v42 = vld [vmem:[%s4894_s9 + $0xb0] sm:$0xff] }
0x1326   :  { %v2323_v6 = vmul.f32 %v4141_v5, %v4137_v41  ;;  %v3292_v5 = vld [vmem:[%s4894_s9 + $0xb8] sm:$0xff] }
0x1328   :  { %3737 = vmatprep.mubr.msk.f32.mxu1 %vm368_vm1, %v2323_v6  ;;  %v4047_v6 = vpack.c.bf16 %v3292_v5, %v3291_v42  ;;  %v4154_v42 = vmov 0.0|0.0   ;;  %v2867_v5 = vld [vmem:[%s4896_s10 + $0x10] sm:$0xff] }
0x1329   :  { %3738 = vmatmul.mubr.msk.f32.vlgmr.msra.gmra.mrb[24].mxu1 %vm368_vm1, %v2324_v7  ;;  %v3293_v7 = vld [vmem:[%s4894_s9 + $0xc0] sm:$0xff] }
0x132a   :  { %4030 = vmatpush3.bf16.msra.mxu1 %v4027_v37 }
0x132b   :  { %4032 = vmatprep.subr.bf16.mxu1 %v4031_v44 }
0x132e   :  { %4034 = vmatpush3.bf16.msra.mxu1 %v4031_v44 }
0x132f   :  { %4067 = vmatprep.subr.bf16.mxu1 %v4154_v42 }
0x13fc   :  { %v3739_v14 = vpop.f32.mrb[24].mxu1 }
0x13fd   :  { %v2397_v16 = vpop.f32.mrb[25].mxu1 }
0x13fe   :  { %3744 = vmatprep.mubr.msk.f32.mxu0 %vm368_vm1, %v2397_v16 }
0x13ff   :  { %3745 = vmatmul.mubr.msk.f32.vlgmr.msra.gmra.mrb[20].mxu0 %vm368_vm1, %v3739_v14  ;;  %v3296_v14 = vld [vmem:[%s4894_s9 + $0xd8] sm:$0xff] }
0x1400   :  { %4026 = vmatpush3.bf16.msra.mxu0 %v4023_v12  ;;  %3751 = vmatprep.mubr.msk.f32.mxu0 %vm368_vm1, %v1936_v23  ;;  %v4051_v12 = vpack.c.bf16 %v3294_v8, %v3293_v7  ;;  %v4055_v16 = vpack.c.bf16 %v3296_v14, %v3295_v9  ;;  %v4156_v8 = vmov 0.0   ;;  %v4157_v9 = vmov 0  }
0x1401   :  { %4036 = vmatprep.subr.bf16.mxu0 %v4035_v15  ;;  %4093 = vset.pattern.permute.xlu0 %v4157_v9 }
0x1407   :  { %3752 = vmatmul.mubr.msk.f32.vlgmr.msra.gmra.mrb[20].mxu0 %vm368_vm1, %v3692_v35 }
0x1408   :  { %4038 = vmatpush3.bf16.msra.mxu0 %v4035_v15 }
0x1409   :  { %4040 = vmatprep.subr.bf16.mxu0 %v4039_v63 }
0x140c   :  { %4042 = vmatpush3.bf16.msra.mxu0 %v4039_v63 }
0x140d   :  { %4044 = vmatprep.subr.bf16.mxu0 %v4043_v4 }
0x1410   :  { %4046 = vmatpush3.bf16.msra.mxu0 %v4043_v4 }
0x1411   :  { %4048 = vmatprep.subr.bf16.mxu0 %v4047_v6 }
0x1414   :  { %4050 = vmatpush3.bf16.msra.mxu0 %v4047_v6  ;;  %v2868_v6 = vld [vmem:[%s4896_s10 + $0x18] sm:$0xff] }
0x1415   :  { %4052 = vmatprep.subr.bf16.mxu0 %v4051_v12  ;;  %v4071_v7 = vpack.c.bf16 %v2868_v6, %v2867_v5 }
0x1418   :  { %4054 = vmatpush3.bf16.msra.mxu0 %v4051_v12  ;;  %v2871_v12 = vld [vmem:[%s4897_s14] sm:$0x3] }
0x1419   :  { %4056 = vmatprep.subr.bf16.mxu0 %v4055_v16 }
0x141c   :  { %4058 = vmatpush3.bf16.msra.mxu0 %v4055_v16 }
0x14da   :  { %v3753_v20 = vpop.f32.mrb[20].mxu0 }
0x14db   :  { %v2572_v21 = vadd.f32 %v3753_v20, %v4577_v3  ;;  %v2562_v24 = vpop.f32.mrb[21].mxu0  ;;  %v3298_v20 = vld [vmem:[%s4894_s9 + $0xe8] sm:$0xff] }
0x14dc   :  { %v2571_v25 = vadd.f32 %v2562_v24, %v4575_v2  ;;  %v3299_v24 = vld [vmem:[%s4894_s9 + $0xf0] sm:$0xff] }
0x14dd   :  { %v2578_v26 = vadd.f32 %v2576_v19, %v2572_v21 }
0x14de   :  { %v2577_v27 = vadd.f32 %v2576_v19, %v2571_v25  ;;  %v3297_v19 = vld [vmem:[%s4894_s9 + $0xe0] sm:$0xff]  ;;  %v3300_v25 = vld [vmem:[%s4894_s9 + $0xf8] sm:$0xff] }
0x14df   :  { %v2582_v28 = vsel %vm59_vm0, %v2578_v26, 0.0  ;;  %v4059_v21 = vpack.c.bf16 %v3298_v20, %v3297_v19 }
0x14e0   :  { %2583 = vadd.xlane.f32.xlu1 %v2582_v28  ;;  %v2579_v29 = vsel %vm59_vm0, %v2577_v27, 0.0 }
0x14e1   :  { %2580 = vadd.xlane.f32.xlu0 %v2579_v29  ;;  %4060 = vmatprep.subr.bf16.mxu0 %v4059_v21 }
0x14e2   :  { %4062 = vmatpush3.bf16.msra.mxu0 %v4059_v21 }
0x156d   :  { %v2584_v30 = vpop.xlane.xlu1 %2583 }
0x156e   :  { %v2586_v31 = vmul.f32 0.03125, %v2584_v30  ;;  %v2581_v32 = vpop.xlane.xlu0 %2580 }
0x156f   :  { %v2585_v33 = vmul.f32 0.03125, %v2581_v32 }
0x1570   :  { %v2588_v34 = vsub.f32 %v2578_v26, %v2586_v31  ;;  %v4063_v26 = vpack.c.bf16 %v3300_v25, %v3299_v24  ;;  %v2856_v25 = vrot.slane %v4716_v17, %v1469_v55  ;;  %v3048_v55 = vld [vmem:[%s4898_s12] sm:$0xff] }
0x1571   :  { %v2587_v40 = vsub.f32 %v2577_v27, %v2585_v33  ;;  %v3282_v27 = vld [vmem:[%s4895_s8 + $0x1] ss:$0 sm:$0xff] }
0x1572   :  { %v2590_v35 = vmul.f32 %v2588_v34, %v2588_v34  ;;  %4064 = vmatprep.subr.bf16.mxu0 %v4063_v26 }
0x1573   :  { %v2589_v23 = vmul.f32 %v2587_v40, %v2587_v40  ;;  %4066 = vmatpush3.bf16.msra.mxu0 %v4063_v26 }
0x1574   :  { %v2594_v3 = vsel %vm59_vm0, %v2590_v35, 0.0 }
0x1575   :  { %2595 = vadd.xlane.f32.xlu1 %v2594_v3  ;;  %v2591_v2 = vsel %vm59_vm0, %v2589_v23, 0.0 }
0x1576   :  { %2592 = vadd.xlane.f32.xlu0 %v2591_v2 }
0x1602   :  { %v2596_v45 = vpop.xlane.xlu1 %2595 }
0x1603   :  { %v2598_v47 = vmul.f32 0.03125, %v2596_v45  ;;  %v2593_v48 = vpop.xlane.xlu0 %2592 }
0x1604   :  { %v2597_v49 = vmul.f32 0.03125, %v2593_v48 }
0x1605   :  { %v2600_v50 = vadd.f32 1e-05, %v2598_v47 }
0x1606   :  { %v2599_v51 = vadd.f32 1e-05, %v2597_v49 }
0x1607   :  { %4142 = vrsqrt.f32 %v2600_v50  ;;  %v2749_v50 = vrot.slane %v4716_v17, %v1362_v13 }
0x1608   :  { %4144 = vrsqrt.f32 %v2599_v51 }
0x1611   :  { %v4143_v53 = vpop.eup %4142 }
0x1612   :  { %v4145_v54 = vpop.eup %4144  ;;  %v2604_v57 = vmul.f32 %v4143_v53, %v2588_v34 }
0x1613   :  { %v2603_v59 = vmul.f32 %v4145_v54, %v2587_v40 }
0x1614   :  { %v2610_v60 = vmul.f32 %v2608_v52, %v2604_v57 }
0x1615   :  { %v2609_v61 = vmul.f32 %v2608_v52, %v2603_v59 }
0x1616   :  { %v4747_v41 = vadd.f32 %v2614_v58, %v2610_v60 }
0x1617   :  { %v4745_v46 = vadd.f32 %v2614_v58, %v2609_v61 }
0x1619   :  { %3762 = vmatprep.mubr.msk.f32.mxu1 %vm59_vm0, %v4745_v46 }
0x161a   :  { %3763 = vmatmul.mubr.msk.f32.vlgmr.msra.gmra.mrb[26].mxu1 %vm59_vm0, %v4747_v41 }
0x161b   :  { %3808 = vmatprep.mubr.msk.f32.mxu1 %vm4155_vm3, %v4156_v8 }
0x16ed   :  { %v3764_v28 = vpop.f32.mrb[26].mxu1 }
0x16ee   :  { %v2708_v29 = vadd.f32 %v3764_v28, %v3282_v27  ;;  %v2702_v30 = vpop.f32.mrb[27].mxu1 }
0x16ef   :  { %v2703_v31 = vadd.f32 %v3282_v27, %v2702_v30 }
0x16f0   :  { %v2712_v32 = vmul.f32 %v2708_v29, %v2708_v29 }
0x16f1   :  { %v2711_v33 = vmul.f32 %v2703_v31, %v2703_v31 }
0x16f2   :  { %v2714_v34 = vmul.f32 %v2712_v32, %v2708_v29 }
0x16f3   :  { %v2713_v40 = vmul.f32 %v2711_v33, %v2703_v31 }
0x16f4   :  { %v2716_v35 = vmul.f32 0.044715, %v2714_v34 }
0x16f5   :  { %v2715_v23 = vmul.f32 0.044715, %v2713_v40 }
0x16f6   :  { %v2718_v3 = vadd.f32 %v2716_v35, %v2708_v29  ;;  %v2870_v35 = vld [vmem:[%s4896_s10 + $0x21] sm:$0x7] }
0x16f7   :  { %v2717_v2 = vadd.f32 %v2715_v23, %v2703_v31  ;;  %v4074_v23 = vpack.c.bf16 %v3049_v39, %v3048_v55 }
0x16f8   :  { %v2720_v22 = vmul.f32 0.7978846, %v2718_v3  ;;  %v3050_v3 = vld [vmem:[%s4898_s12 + $0x10] sm:$0xff] }
0x16f9   :  { %v2719_v36 = vmul.f32 0.7978846, %v2717_v2  ;;  %v3051_v2 = vld [vmem:[%s4898_s12 + $0x18] sm:$0xff] }
0x16fa   :  { %4146 = vtanh.f32 %v2720_v22  ;;  %v4077_v22 = vpack.c.bf16 %v3051_v2, %v3050_v3 }
0x16fb   :  { %4148 = vtanh.f32 %v2719_v36  ;;  %v3052_v36 = vld [vmem:[%s4898_s12 + $0x20] sm:$0xff] }
0x1704   :  { %v4147_v37 = vpop.eup %4146 }
0x1705   :  { %v4149_v38 = vpop.eup %4148  ;;  %v2724_v43 = vadd.f32 1.0, %v4147_v37  ;;  %v3053_v37 = vld [vmem:[%s4898_s12 + $0x28] sm:$0xff] }
0x1706   :  { %v2723_v44 = vadd.f32 1.0, %v4149_v38  ;;  %v4080_v38 = vpack.c.bf16 %v3053_v37, %v3052_v36 }
0x1707   :  { %v2726_v45 = vmul.f32 0.5, %v2724_v43  ;;  %v3054_v43 = vld [vmem:[%s4898_s12 + $0x30] sm:$0xff] }
0x1708   :  { %v2725_v47 = vmul.f32 0.5, %v2723_v44  ;;  %v3055_v44 = vld [vmem:[%s4898_s12 + $0x38] sm:$0xff] }
0x1709   :  { %v2728_v49 = vmul.f32 %v2726_v45, %v2708_v29  ;;  %v2862_v29 = vrot.slane %v4716_v17, %v1475_v56  ;;  %v2959_v17 = vld [vmem:[%s4899_s15] sm:$0x3]  ;;  %v4083_v45 = vpack.c.bf16 %v3055_v44, %v3054_v43 }
0x170a   :  { %v2727_v48 = vmul.f32 %v2725_v47, %v2703_v31  ;;  %v3301_v47 = vld [vmem:[%s4896_s10 + $0x20] ss:$0 sm:$0xff] }
0x170c   :  { %3797 = vmatprep.mubr.f32.mxu0 %v2727_v48 }
0x170d   :  { %3798 = vmatmul.mubr.f32.vlgmr.msra.gmra.mrb[22].mxu0 %v2728_v49 }
0x17e0   :  { %v3799_v51 = vpop.f32.mrb[22].mxu0 }
0x17e1   :  { %v2822_v52 = vadd.f32 %v3799_v51, %v2749_v50  ;;  %v2816_v53 = vpop.f32.mrb[23].mxu0 }
0x17e2   :  { %v2817_v54 = vadd.f32 %v2816_v53, %v2749_v50 }
0x17e3   :  { %v2826_v57 = vadd.f32 %v2822_v52, %v4747_v41 }
0x17e4   :  { %v2825_v59 = vadd.f32 %v2817_v54, %v4745_v46  ;;  %v2865_v46 = vld [vmem:[%s4896_s10] sm:$0xff] }
0x17e5   :  { %v2830_v58 = vsel %vm59_vm0, %v2826_v57, 0.0  ;;  %v4068_v4 = vpack.c.bf16 %v2866_v1, %v2865_v46  ;;  %v3305_v54 = vld [vmem:[%s4900_s11] ss:$0 sm:$0xff] }
0x17e6   :  { %2831 = vadd.xlane.f32.xlu0 %v2830_v58  ;;  %v2827_v60 = vsel %vm59_vm0, %v2825_v59, 0.0 }
0x17e7   :  { %2828 = vadd.xlane.f32.xlu1 %v2827_v60  ;;  %4069 = vmatpush3.bf16.msra.mxu1 %v4068_v4 }
0x17e8   :  { %4070 = vmatprep.subr.bf16.mxu1 %v4154_v42 }
0x17eb   :  { %4072 = vmatpush3.bf16.msra.mxu1 %v4071_v7 }
0x17ec   :  { %3811 = vmatprep.subr.mxu1 %v4156_v8 }
0x1873   :  { %v2832_v61 = vpop.xlane.xlu0 %2831 }
0x1874   :  { %v2834_v10 = vmul.f32 0.03125, %v2832_v61  ;;  %v2829_v11 = vpop.xlane.xlu1 %2828  ;;  %v3306_v61 = vld [vmem:[%s4901_s13] ss:$0 sm:$0xff] }
0x1875   :  { %v2833_v15 = vmul.f32 0.03125, %v2829_v11 }
0x1876   :  { %v2836_v18 = vsub.f32 %v2826_v57, %v2834_v10 }
0x1877   :  { %v2835_v13 = vsub.f32 %v2825_v59, %v2833_v15 }
0x1878   :  { %v2838_v62 = vmul.f32 %v2836_v18, %v2836_v18 }
0x1879   :  { %v2837_v63 = vmul.f32 %v2835_v13, %v2835_v13 }
0x187a   :  { %v2842_v0 = vsel %vm59_vm0, %v2838_v62, 0.0 }
0x187b   :  { %2843 = vadd.xlane.f32.xlu0 %v2842_v0  ;;  %v2839_v41 = vsel %vm59_vm0, %v2837_v63, 0.0 }
0x187c   :  { %2840 = vadd.xlane.f32.xlu1 %v2839_v41 }
0x1891   :  { %2874 = vperm.xlu0 %4093, %v2871_v12  }
0x1908   :  { %v2844_v14 = vpop.xlane.xlu0 %2843 }
0x1909   :  { %v2846_v16 = vmul.f32 0.03125, %v2844_v14  ;;  %v2841_v19 = vpop.xlane.xlu1 %2840 }
0x190a   :  { %v2845_v20 = vmul.f32 0.03125, %v2841_v19 }
0x190b   :  { %v2848_v21 = vadd.f32 1e-05, %v2846_v16 }
0x190c   :  { %v2847_v24 = vadd.f32 1e-05, %v2845_v20 }
0x190d   :  { %4150 = vrsqrt.f32 %v2848_v21 }
0x190e   :  { %4152 = vrsqrt.f32 %v2847_v24 }
0x1910   :  { %v2875_v48 = vpop.permute.xlu0 %2874 }
0x1911   :  { %v2881_v49 = vmul.f32 %v3301_v47, %v2875_v48 }
0x1917   :  { %v4151_v26 = vpop.eup %4150 }
0x1918   :  { %v4153_v27 = vpop.eup %4152  ;;  %v2852_v28 = vmul.f32 %v4151_v26, %v2836_v18 }
0x1919   :  { %v2851_v30 = vmul.f32 %v4153_v27, %v2835_v13 }
0x191a   :  { %v2858_v31 = vmul.f32 %v2856_v25, %v2852_v28 }
0x191b   :  { %v2857_v32 = vmul.f32 %v2856_v25, %v2851_v30 }
0x191c   :  { %v2864_v33 = vadd.f32 %v2862_v29, %v2858_v31 }
0x191d   :  { %v2863_v34 = vadd.f32 %v2862_v29, %v2857_v32 }
0x191e   :  { %v2884_v40 = vrot.slane %v2864_v33, 7 }
0x1920   :  { %v2886_v56 = vsel %vm2885_vm4, %v2884_v40, %v2863_v34 }
0x1921   :  { %3809 = vmatmul.mubr.msk.f32.vlgmr.msra.gmra.mrb[28].mxu1 %vm59_vm0, %v2886_v56 }
0x1922   :  { %3812 = vmatpush3.msk.msra.mxu1 %vm2964_vm5, %v2870_v35  ;;  %3813 = vmatprep.mubr.msk.f32.mxu1 %vm4155_vm3, %v4156_v8 }
0x1923   :  { %4073 = vmatprep.subr.bf16.mxu1 %v4154_v42 }
0x1925   :  { %3814 = vmatmul.mubr.msk.f32.vlgmr.msra.gmra.mrb[30].mxu1 %vm2960_vm6, %v2959_v17 }
0x1926   :  { %4075 = vmatpush3.bf16.msra.mxu1 %v4074_v23  ;;  %3832 = vmatprep.mubr.msk.f32.mxu1 %vm4155_vm3, %v4156_v8 }
0x1927   :  { %4076 = vmatprep.subr.bf16.mxu1 %v4154_v42 }
0x192a   :  { %4078 = vmatpush3.bf16.msra.mxu1 %v4077_v22 }
0x192b   :  { %4079 = vmatprep.subr.bf16.mxu1 %v4154_v42 }
0x192e   :  { %4081 = vmatpush3.bf16.msra.mxu1 %v4080_v38 }
0x192f   :  { %4082 = vmatprep.subr.bf16.mxu1 %v4154_v42 }
0x1932   :  { %4084 = vmatpush3.bf16.msra.mxu1 %v4083_v45 }
0x19f4   :  { %v2955_v50 = vpop.f32.mrb[28].mxu1 }
0x19f5   :  { %v2956_v51 = vadd.f32 %v2955_v50, %v2881_v49  ;;  %v3810_v52 = vpop.f32.mrb[29].mxu1 }
0x19f8   :  { %v3034_v53 = vpop.f32.mrb[30].mxu1 }
0x19f9   :  { %v3038_v57 = vadd.f32 %v3034_v53, %v2956_v51  ;;  %v3815_v59 = vpop.f32.mrb[31].mxu1 }
0x19fb   :  { %v3046_v58 = vadd.f32 %v3305_v54, %v3038_v57 }
0x19fd   :  { %v3047_v60 = vmax.f32 %v3046_v58, 0.0 }
0x19ff   :  { %3833 = vmatmul.mubr.msk.f32.vlgmr.msra.gmra.mrb[32].mxu1 %vm3063_vm7, %v3047_v60 }
0x1ad2   :  { %v3133_v10 = vpop.f32.mrb[32].mxu1 }
0x1ad3   :  { %v3134_v11 = vadd.f32 %v3306_v61, %v3133_v10  ;;  %v3834_v15 = vpop.f32.mrb[33].mxu1 }
0x1ad5   :  { %3137 = vst [vmem:[%s4902_s16] sm:$0x3] %v3134_v11 }

</bundles_post_ra>
